<compile_context>
chip_gen: v7x
topology: tpu7x:2x2x1
jax: 0.10.0
libtpu: 0.0.40
codegen_flags: <defaults>
</compile_context>

<pallas_src>
import functools

import jax
import jax.numpy as jnp
from jax.experimental import pallas as pl
from jax.experimental.pallas import tpu as pltpu


# torch LSTM gate order is (i, f, g, o); the kernel uses (i, f, o, g) so one
# sigmoid covers the first 3 gate blocks and one tanh covers the last.
_GATE_PERM = (0, 1, 3, 2)          # _GATE_PERM[new_block] = old_block


def _round_up(x, m):
    return ((x + m - 1) // m) * m


def _pad_gate_mat(w, H, Hp):
    """(rows, 4H) gate-blocked matrix -> (rows, 4Hp), reordered to (i,f,o,g)."""
    rows = w.shape[0]
    out = jnp.zeros((rows, 4 * Hp), w.dtype)
    for new_g, old_g in enumerate(_GATE_PERM):
        out = out.at[:, new_g * Hp:new_g * Hp + H].set(
            w[:, old_g * H:(old_g + 1) * H])
    return out


def _pick_t_chunk(T, Bs, Hp, out_p, budget_bytes=8 << 20):
    """Largest divisor of T whose per-chunk VMEM scratch stays under budget."""
    per_step = Bs * (4 * Hp + Hp + out_p) * 4
    target = max(1, budget_bytes // max(per_step, 1))
    cands = [d for d in range(1, T + 1) if T % d == 0 and d <= target]
    tc = max(cands) if cands else 1
    if tc == 1 and 1 < T <= target:
        tc = T          # e.g. prime T that still fits in one chunk
    return tc


def mdn_lstm_kernel(
    x_ref,        # (Tc*Bs, Z)    time-major chunk of inputs (row = t*Bs + b)
    h0_ref,       # (Bs, Hp)      initial hidden for this batch shard
    c0_ref,       # (Bs, Hp)      initial cell
    w_ih_ref,     # (Z, 4Hp)      LSTM input weights  (gate order i,f,o,g)
    w_hh_ref,     # (Hp, 4Hp)     LSTM hidden weights (gate order i,f,o,g)
    b_ref,        # (1, 4Hp)      b_ih + b_hh
    w_head_ref,   # (Hp, OutP)    [W_pi | W_mu | W_logsigma] fused, lane-padded
    b_head_ref,   # (1, OutP)
    out_ref,      # (Tc*Bs, OutP) [softmax(pi) | mu | exp(logsigma) | 0-pad]
    h_out_ref,    # (Bs, Hp)      final hidden (also the carried h across chunks)
    c_out_ref,    # (Bs, Hp)      final cell   (also the carried c across chunks)
    xw_s,         # VMEM (Tc*Bs, 4Hp) scratch: x @ W_ih + b for this chunk
    hseq_s,       # VMEM (Tc*Bs, Hp)  scratch: per-step hidden states
    *,
    t_chunk, batch_sh, hidden_p, n_gaussians, z_size, out_width,
):
    Tc, Bs, Hp = t_chunk, batch_sh, hidden_p
    G, Z = n_gaussians, z_size
    GZ = G * Z

    # ---- first chunk of this shard: load the initial carry into the outputs.
    @pl.when(pl.program_id(1) == 0)
    def _():
        h_out_ref[...] = h0_ref[...]
        c_out_ref[...] = c0_ref[...]

    # ---- Phase 1: input projection for all timesteps of the chunk (1 matmul).
    xw_s[...] = (
        jnp.dot(x_ref[...], w_ih_ref[...], preferred_element_type=jnp.float32)
        + b_ref[...])

    # ---- Phase 2: sequential recurrence (only h @ W_hh + gate math per step).
    w_hh = w_hh_ref[...]

    def step(t, carry):
        h_prev, c_prev = carry
        row = pl.multiple_of(t * Bs, Bs)              # Bs is a multiple of 8
        gates = xw_s[pl.ds(row, Bs), :] + jnp.dot(
            h_prev.astype(w_hh.dtype), w_hh,
            preferred_element_type=jnp.float32)        # (Bs, 4Hp)
        sig = jax.nn.sigmoid(gates[:, 0:3 * Hp])       # one pass: i, f, o
        i_g = sig[:, 0 * Hp:1 * Hp]
        f_g = sig[:, 1 * Hp:2 * Hp]
        o_g = sig[:, 2 * Hp:3 * Hp]
        g_g = jnp.tanh(gates[:, 3 * Hp:4 * Hp])
        c_new = f_g * c_prev + i_g * g_g
        h_new = o_g * jnp.tanh(c_new)
        hseq_s[pl.ds(row, Bs), :] = h_new
        return h_new, c_new

    h_f, c_f = jax.lax.fori_loop(
        0, Tc, step, (h_out_ref[...], c_out_ref[...]), unroll=min(Tc, 4))
    h_out_ref[...] = h_f
    c_out_ref[...] = c_f

    # ---- Phase 3: fused MDN heads over the whole chunk (1 matmul), then a
    #      single lane-dense store of [softmax(pi) | mu | sigma | 0-pad].
    heads = (
        jnp.dot(hseq_s[...].astype(w_head_ref.dtype), w_head_ref[...],
                preferred_element_type=jnp.float32)
        + b_head_ref[...])                             # (Tc*Bs, OutP)

    pi_logits = heads[:, 0:GZ]                         # g-major, z-minor
    mu = heads[:, GZ:2 * GZ]
    sigma = jnp.exp(heads[:, 2 * GZ:3 * GZ])

    groups = [pi_logits[:, g * Z:(g + 1) * Z] for g in range(G)]
    m = groups[0]
    for g in range(1, G):
        m = jnp.maximum(m, groups[g])
    exps = [jnp.exp(grp - m) for grp in groups]
    s = exps[0]
    for g in range(1, G):
        s = s + exps[g]
    inv_s = 1.0 / s
    pi = jnp.concatenate([e * inv_s for e in exps], axis=1)    # (Tc*Bs, GZ)

    pieces = [pi, mu, sigma]
    pad = out_width - 3 * GZ
    if pad > 0:
        pieces.append(jnp.zeros((Tc * Bs, pad), jnp.float32))
    out_ref[...] = jnp.concatenate(pieces, axis=1)             # one dense vst


def mdn_lstm_forward(x, h, params, *, n_gaussians, t_chunk=None,
                     batch_shards=1, use_bf16_weights=False):
    """Pallas forward.  x: (B, T, Z); h = (h0, c0), each (1, B, H)."""
    B, T, Z = x.shape
    H = params["w_hh_T"].shape[0]
    G = n_gaussians
    GZ = G * Z
    out_cols = 3 * GZ

    # ---- static layout parameters ------------------------------------------
    S = batch_shards if (batch_shards >= 1 and B % batch_shards == 0) else 1
    Bs_real = B // S
    Bs = _round_up(max(Bs_real, 1), 8)       # sublane-aligned batch per shard
    Hp = _round_up(H, 128)                   # lane-aligned hidden size
    OutP = _round_up(out_cols, 128)          # lane-dense output slab width
    if t_chunk is not None and T % t_chunk == 0:
        Tc = t_chunk
    else:
        Tc = _pick_t_chunk(T, Bs, Hp, OutP)
    n_chunks = T // Tc

    f32 = jnp.float32
    wdt = jnp.bfloat16 if use_bf16_weights else f32
    # TODO(synk): enable use_bf16_weights on v6e/v7x serving paths (bf16 MXU
    # operands, f32 accumulation); kept off by default to match f32 reference.

    # ---- parameters: reorder gates (i,f,o,g), pad H->Hp, fuse + pad heads ---
    w_ih = _pad_gate_mat(params["w_ih_T"].astype(f32), H, Hp).astype(wdt)
    w_hh = _pad_gate_mat(params["w_hh_T"].astype(f32), H, Hp)
    w_hh = jnp.pad(w_hh, ((0, Hp - H), (0, 0))).astype(wdt)
    b_lstm = _pad_gate_mat(params["b_lstm"].astype(f32), H, Hp)     # stays f32

    w_head = jnp.concatenate(
        [params["w_pi_T"], params["w_mu_T"], params["w_ls_T"]], axis=1)
    w_head = jnp.pad(w_head.astype(f32),
                     ((0, Hp - H), (0, OutP - out_cols))).astype(wdt)
    b_head = jnp.concatenate(
        [params["b_pi"], params["b_mu"], params["b_ls"]], axis=1)
    b_head = jnp.pad(b_head.astype(f32), ((0, 0), (0, OutP - out_cols)))

    # ---- activations: shard batch, zero-pad to (Bs, Hp), time-major layout --
    x_t = jnp.transpose(x, (1, 0, 2)).reshape(T, S, Bs_real, Z)
    x_t = jnp.pad(x_t, ((0, 0), (0, 0), (0, Bs - Bs_real), (0, 0)))
    x_sh = jnp.transpose(x_t, (1, 0, 2, 3)).reshape(S, T * Bs, Z).astype(wdt)

    def _pad_state(s):                        # (1, B, H) -> (S, Bs, Hp)
        s2 = s[0].astype(f32).reshape(S, Bs_real, H)
        return jnp.pad(s2, ((0, 0), (0, Bs - Bs_real), (0, Hp - H)))

    h0 = _pad_state(h[0])
    c0 = _pad_state(h[1])

    kernel = functools.partial(
        mdn_lstm_kernel, t_chunk=Tc, batch_sh=Bs, hidden_p=Hp,
        n_gaussians=G, z_size=Z, out_width=OutP)

    whole = lambda shape: pl.BlockSpec(shape, lambda s, c: (0, 0))

    grid_spec = pltpu.PrefetchScalarGridSpec(
        num_scalar_prefetch=0,
        grid=(S, n_chunks),                   # (batch shards, sequence chunks)
        in_specs=[
            pl.BlockSpec((None, Tc * Bs, Z), lambda s, c: (s, c, 0)),   # x
            pl.BlockSpec((None, Bs, Hp), lambda s, c: (s, 0, 0)),       # h0
            pl.BlockSpec((None, Bs, Hp), lambda s, c: (s, 0, 0)),       # c0
            whole((Z, 4 * Hp)),                                         # W_ih^T
            whole((Hp, 4 * Hp)),                                        # W_hh^T
            whole((1, 4 * Hp)),                                         # b_lstm
            whole((Hp, OutP)),                                          # W_head
            whole((1, OutP)),                                           # b_head
        ],
        out_specs=[
            pl.BlockSpec((None, Tc * Bs, OutP), lambda s, c: (s, c, 0)),
            pl.BlockSpec((None, Bs, Hp), lambda s, c: (s, 0, 0)),       # h_f
            pl.BlockSpec((None, Bs, Hp), lambda s, c: (s, 0, 0)),       # c_f
        ],
        scratch_shapes=[
            pltpu.VMEM((Tc * Bs, 4 * Hp), jnp.float32),   # x @ W_ih + b
            pltpu.VMEM((Tc * Bs, Hp), jnp.float32),       # per-step hidden seq
        ],
    )

    # Scoped-VMEM limit sized from the actual footprint (+50% headroom),
    # capped at v7x's 64 MiB physical per-core VMEM.
    wbytes = 2 if use_bf16_weights else 4
    vmem_est = (
        2 * Tc * Bs * Z * wbytes                          # x (double-buffered)
        + 2 * Tc * Bs * OutP * 4                          # output slab
        + 2 * 4 * Bs * Hp * 4                             # h0/c0 + h/c carry
        + 2 * ((Z + Hp) * 4 * Hp + Hp * OutP) * wbytes    # weights
        + 2 * (4 * Hp + OutP) * 4                         # biases
        + Tc * Bs * (4 * Hp + Hp) * 4                     # VMEM scratch
    )
    vmem_limit = max(2 << 20, min(int(vmem_est * 1.5), 64 << 20))

    out_shapes = (
        jax.ShapeDtypeStruct((S, T * Bs, OutP), jnp.float32),
        jax.ShapeDtypeStruct((S, Bs, Hp), jnp.float32),
        jax.ShapeDtypeStruct((S, Bs, Hp), jnp.float32),
    )

    heads_sh, h_f, c_f = pl.pallas_call(
        kernel,
        out_shape=out_shapes,
        grid_spec=grid_spec,
        compiler_params=pltpu.CompilerParams(
            # shard axis independent (split across v7x's 2 TensorCores);
            # the chunk axis carries the (h, c) recurrence sequentially.
            dimension_semantics=("parallel", "arbitrary"),
            vmem_limit_bytes=vmem_limit),
    )(x_sh, h0, c0, w_ih, w_hh, b_lstm, w_head, b_head)

    # (S, T*Bs, OutP) -> (B, T, 3, G, Z): drop lane/batch padding, one transpose.
    heads = heads_sh[:, :, :out_cols].reshape(S, T, Bs, 3, G, Z)
    heads = jnp.transpose(heads[:, :, :Bs_real], (0, 2, 1, 3, 4, 5))
    heads = heads.reshape(B, T, 3, G, Z)
    pi, mu, sigma = heads[:, :, 0], heads[:, :, 1], heads[:, :, 2]

    h_out = h_f[:, :Bs_real, :H].reshape(B, H)[None]
    c_out = c_f[:, :Bs_real, :H].reshape(B, H)[None]
    return (pi, mu, sigma), (h_out, c_out)


# ---------------------------------------------------------------------------
# Pure-JAX reference (for correctness check only) — torch gate order i,f,g,o.
# ---------------------------------------------------------------------------
def mdn_lstm_reference(x, h, params, *, n_gaussians):
    B, T, Z = x.shape
    H = params["w_hh_T"].shape[0]
    G = n_gaussians

    def step(carry, xt):
        h_prev, c_prev = carry
        gates = xt @ params["w_ih_T"] + h_prev @ params["w_hh_T"] \
            + params["b_lstm"][0]
        i_g = jax.nn.sigmoid(gates[:, 0 * H:1 * H])
        f_g = jax.nn.sigmoid(gates[:, 1 * H:2 * H])
        g_g = jnp.tanh(gates[:, 2 * H:3 * H])
        o_g = jax.nn.sigmoid(gates[:, 3 * H:4 * H])
        c_new = f_g * c_prev + i_g * g_g
        h_new = o_g * jnp.tanh(c_new)
        return (h_new, c_new), h_new

    (h_f, c_f), ys = jax.lax.scan(step, (h[0][0], h[1][0]),
                                  jnp.transpose(x, (1, 0, 2)))
    y = jnp.transpose(ys, (1, 0, 2))                       # (B, T, H)
    pi = (y @ params["w_pi_T"] + params["b_pi"][0]).reshape(B, T, G, Z)
    mu = (y @ params["w_mu_T"] + params["b_mu"][0]).reshape(B, T, G, Z)
    ls = (y @ params["w_ls_T"] + params["b_ls"][0]).reshape(B, T, G, Z)
    pi = jax.nn.softmax(pi, axis=2)
    return (pi, mu, jnp.exp(ls)), (h_f[None], c_f[None])


def init_params(key, z_size, hidden, n_gaussians):
    """Deterministic init mimicking PyTorch's uniform(-1/sqrt(H), 1/sqrt(H))."""
    G, Z, H = n_gaussians, z_size, hidden
    k = 1.0 / jnp.sqrt(jnp.float32(H))
    keys = jax.random.split(key, 10)
    u = lambda kk, shape: jax.random.uniform(kk, shape, jnp.float32, -k, k)
    w_ih = u(keys[0], (4 * H, Z))       # torch layout (4H, Z), gate order i,f,g,o
    w_hh = u(keys[1], (4 * H, H))
    b_ih = u(keys[2], (4 * H,))
    b_hh = u(keys[3], (4 * H,))
    return {
        "w_ih_T": w_ih.T,                                   # (Z, 4H)
        "w_hh_T": w_hh.T,                                   # (H, 4H)
        "b_lstm": (b_ih + b_hh)[None, :],                   # (1, 4H)
        "w_pi_T": u(keys[4], (G * Z, H)).T,                 # (H, G*Z)
        "b_pi": u(keys[5], (G * Z,))[None, :],
        "w_mu_T": u(keys[6], (G * Z, H)).T,
        "b_mu": u(keys[7], (G * Z,))[None, :],
        "w_ls_T": u(keys[8], (G * Z, H)).T,
        "b_ls": u(keys[9], (G * Z,))[None, :],
    }


if __name__ == "__main__":
    Z_SIZE = 4
    HIDDEN = 32
    N_GAUSSIANS = 5
    BATCH = 2
    SEQ = 8

    key = jax.random.PRNGKey(0)
    kx, kp = jax.random.split(key)
    x = jax.random.normal(kx, (BATCH, SEQ, Z_SIZE), jnp.float32)
    h0 = jnp.zeros((1, BATCH, HIDDEN), jnp.float32)
    c0 = jnp.zeros((1, BATCH, HIDDEN), jnp.float32)
    params = init_params(kp, Z_SIZE, HIDDEN, N_GAUSSIANS)

    (pi_r, mu_r, sigma_r), (h_r, c_r) = mdn_lstm_reference(
        x, (h0, c0), params, n_gaussians=N_GAUSSIANS)

    def check(outs):
        (pi, mu, sigma), (h_f, c_f) = outs
        assert pi.shape == (BATCH, SEQ, N_GAUSSIANS, Z_SIZE)
        assert mu.shape == (BATCH, SEQ, N_GAUSSIANS, Z_SIZE)
        assert sigma.shape == (BATCH, SEQ, N_GAUSSIANS, Z_SIZE)
        assert h_f.shape == (1, BATCH, HIDDEN) and c_f.shape == (1, BATCH, HIDDEN)
        for a, b in [(pi, pi_r), (mu, mu_r), (sigma, sigma_r),
                     (h_f, h_r), (c_f, c_r)]:
            assert jnp.allclose(a, b, rtol=1e-2, atol=5e-3), \
                float(jnp.max(jnp.abs(a - b)))

    # Config 1: single batch shard, 2 sequence chunks (exercises the carried
    # (h, c) across grid steps).
    out1 = mdn_lstm_forward(x, (h0, c0), params,
                            n_gaussians=N_GAUSSIANS, t_chunk=4)
    jax.block_until_ready(out1)
    check(out1)

    # Config 2: 2 batch shards ("parallel" axis -> v7x dual TensorCores) x
    # 4 sequence chunks.
    out2 = mdn_lstm_forward(x, (h0, c0), params,
                            n_gaussians=N_GAUSSIANS, t_chunk=2, batch_shards=2)
    jax.block_until_ready(out2)
    check(out2)

    print("KERNEL_OK")
</pallas_src>

<mosaic_0001>
module attributes {stable_mosaic.version = 11 : i64} {
  func.func @mdn_lstm_kernel(%arg0: i32, %arg1: i32, %arg2: memref<1x32x4xf32, #tpu.memory_space<vmem>>, %arg3: memref<1x8x128xf32, #tpu.memory_space<vmem>>, %arg4: memref<1x8x128xf32, #tpu.memory_space<vmem>>, %arg5: memref<4x512xf32, #tpu.memory_space<vmem>>, %arg6: memref<128x512xf32, #tpu.memory_space<vmem>>, %arg7: memref<1x512xf32, #tpu.memory_space<vmem>>, %arg8: memref<128x128xf32, #tpu.memory_space<vmem>>, %arg9: memref<1x128xf32, #tpu.memory_space<vmem>>, %arg10: memref<1x32x128xf32, #tpu.memory_space<vmem>>, %arg11: memref<1x8x128xf32, #tpu.memory_space<vmem>>, %arg12: memref<1x8x128xf32, #tpu.memory_space<vmem>>, %arg13: memref<32x512xf32, #tpu.memory_space<vmem>>, %arg14: memref<32x128xf32, #tpu.memory_space<vmem>>) attributes {dimension_semantics = [#tpu.dimension_semantics<parallel>, #tpu.dimension_semantics<arbitrary>], iteration_bounds = array<i64: 1, 2>, scalar_prefetch = 0 : i64, scratch_operands = 2 : i64, tpu.core_type = #tpu.core_type<tc>, window_params = [{transform_indices = @transform_0, window_bounds = array<i64: 1, 32, 4>}, {transform_indices = @transform_1, window_bounds = array<i64: 1, 8, 128>}, {transform_indices = @transform_2, window_bounds = array<i64: 1, 8, 128>}, {pipeline_mode = #tpu.pipeline_mode<synchronous>, transform_indices = @transform_3, window_bounds = array<i64: 4, 512>}, {pipeline_mode = #tpu.pipeline_mode<synchronous>, transform_indices = @transform_4, window_bounds = array<i64: 128, 512>}, {pipeline_mode = #tpu.pipeline_mode<synchronous>, transform_indices = @transform_5, window_bounds = array<i64: 1, 512>}, {pipeline_mode = #tpu.pipeline_mode<synchronous>, transform_indices = @transform_6, window_bounds = array<i64: 128, 128>}, {pipeline_mode = #tpu.pipeline_mode<synchronous>, transform_indices = @transform_7, window_bounds = array<i64: 1, 128>}, {transform_indices = @transform_8, window_bounds = array<i64: 1, 32, 128>}, {transform_indices = @transform_9, window_bounds = array<i64: 1, 8, 128>}, {transform_indices = @transform_10, window_bounds = array<i64: 1, 8, 128>}]} {
    %c0_i32 = arith.constant 0 : i32
    %0 = arith.cmpi eq, %arg1, %c0_i32 : i32
    %1 = arith.extui %0 : i1 to i32
    %c0_i32_0 = arith.constant 0 : i32
    %2 = arith.cmpi ne, %1, %c0_i32_0 : i32
    scf.if %2 {
      %c0_55 = arith.constant 0 : index
      %c0_56 = arith.constant 0 : index
      %c0_57 = arith.constant 0 : index
      %164 = vector.load %arg3[%c0_55, %c0_56, %c0_57] : memref<1x8x128xf32, #tpu.memory_space<vmem>>, vector<1x8x128xf32>
      %165 = vector.shape_cast %164 : vector<1x8x128xf32> to vector<8x128xf32>
      %c0_58 = arith.constant 0 : index
      %c0_59 = arith.constant 0 : index
      %c0_60 = arith.constant 0 : index
      %166 = vector.load %arg11[%c0_58, %c0_59, %c0_60] : memref<1x8x128xf32, #tpu.memory_space<vmem>>, vector<1x8x128xf32>
      %167 = vector.shape_cast %166 : vector<1x8x128xf32> to vector<8x128xf32>
      %168 = vector.shape_cast %165 : vector<8x128xf32> to vector<1x8x128xf32>
      tpu.vector_store %arg11[%c0_58, %c0_59, %c0_60], %168 {strides = array<i32>} : memref<1x8x128xf32, #tpu.memory_space<vmem>>, vector<1x8x128xf32>,
      %c0_61 = arith.constant 0 : index
      %c0_62 = arith.constant 0 : index
      %c0_63 = arith.constant 0 : index
      %169 = vector.load %arg4[%c0_61, %c0_62, %c0_63] : memref<1x8x128xf32, #tpu.memory_space<vmem>>, vector<1x8x128xf32>
      %170 = vector.shape_cast %169 : vector<1x8x128xf32> to vector<8x128xf32>
      %c0_64 = arith.constant 0 : index
      %c0_65 = arith.constant 0 : index
      %c0_66 = arith.constant 0 : index
      %171 = vector.load %arg12[%c0_64, %c0_65, %c0_66] : memref<1x8x128xf32, #tpu.memory_space<vmem>>, vector<1x8x128xf32>
      %172 = vector.shape_cast %171 : vector<1x8x128xf32> to vector<8x128xf32>
      %173 = vector.shape_cast %170 : vector<8x128xf32> to vector<1x8x128xf32>
      tpu.vector_store %arg12[%c0_64, %c0_65, %c0_66], %173 {strides = array<i32>} : memref<1x8x128xf32, #tpu.memory_space<vmem>>, vector<1x8x128xf32>,
    } else {
    }
    %c0 = arith.constant 0 : index
    %c0_1 = arith.constant 0 : index
    %c0_2 = arith.constant 0 : index
    %3 = vector.load %arg2[%c0, %c0_1, %c0_2] : memref<1x32x4xf32, #tpu.memory_space<vmem>>, vector<1x32x4xf32>
    %4 = vector.shape_cast %3 : vector<1x32x4xf32> to vector<32x4xf32>
    %c0_3 = arith.constant 0 : index
    %c0_4 = arith.constant 0 : index
    %5 = vector.load %arg5[%c0_3, %c0_4] : memref<4x512xf32, #tpu.memory_space<vmem>>, vector<4x512xf32>
    %cst = arith.constant dense<0.000000e+00> : vector<32x512xf32>
    %6 = tpu.matmul %4, %5, %cst {dimension_numbers = #tpu.dot_dimension_numbers<[1], [0], [0], [1], [0, 0, 1, 1], [], []>} : vector<32x4xf32>, vector<4x512xf32>, vector<32x512xf32> -> vector<32x512xf32>
    %c0_5 = arith.constant 0 : index
    %c0_6 = arith.constant 0 : index
    %7 = vector.load %arg7[%c0_5, %c0_6] : memref<1x512xf32, #tpu.memory_space<vmem>>, vector<1x512xf32>
    %8 = vector.broadcast %7 : vector<1x512xf32> to vector<32x512xf32>
    %9 = arith.addf %6, %8 : vector<32x512xf32>
    %c0_7 = arith.constant 0 : index
    %c0_8 = arith.constant 0 : index
    %10 = vector.load %arg13[%c0_7, %c0_8] : memref<32x512xf32, #tpu.memory_space<vmem>>, vector<32x512xf32>
    tpu.vector_store %arg13[%c0_7, %c0_8], %9 {strides = array<i32>} : memref<32x512xf32, #tpu.memory_space<vmem>>, vector<32x512xf32>,
    %c0_9 = arith.constant 0 : index
    %c0_10 = arith.constant 0 : index
    %11 = vector.load %arg6[%c0_9, %c0_10] : memref<128x512xf32, #tpu.memory_space<vmem>>, vector<128x512xf32>
    %c0_11 = arith.constant 0 : index
    %c0_12 = arith.constant 0 : index
    %c0_13 = arith.constant 0 : index
    %12 = vector.load %arg11[%c0_11, %c0_12, %c0_13] : memref<1x8x128xf32, #tpu.memory_space<vmem>>, vector<1x8x128xf32>
    %13 = vector.shape_cast %12 : vector<1x8x128xf32> to vector<8x128xf32>
    %c0_14 = arith.constant 0 : index
    %c0_15 = arith.constant 0 : index
    %c0_16 = arith.constant 0 : index
    %14 = vector.load %arg12[%c0_14, %c0_15, %c0_16] : memref<1x8x128xf32, #tpu.memory_space<vmem>>, vector<1x8x128xf32>
    %15 = vector.shape_cast %14 : vector<1x8x128xf32> to vector<8x128xf32>
    %c0_i32_17 = arith.constant 0 : i32
    %c8_i32 = arith.constant 8 : i32
    %16 = arith.muli %c0_i32_17, %c8_i32 : i32
    %17 = tpu.assume_multiple %16, 8 : i32
    %18 = arith.index_cast %17 : i32 to index
    %c0_18 = arith.constant 0 : index
    %19 = vector.load %arg13[%18, %c0_18] : memref<32x512xf32, #tpu.memory_space<vmem>>, vector<8x512xf32>
    %cst_19 = arith.constant dense<0.000000e+00> : vector<8x512xf32>
    %20 = tpu.matmul %13, %11, %cst_19 {dimension_numbers = #tpu.dot_dimension_numbers<[1], [0], [0], [1], [0, 0, 1, 1], [], []>} : vector<8x128xf32>, vector<128x512xf32>, vector<8x512xf32> -> vector<8x512xf32>
    %21 = arith.addf %19, %20 : vector<8x512xf32>
    %22 = vector.extract_strided_slice %21 {offsets = [0, 0], sizes = [8, 384], strides = [1, 1]} : vector<8x512xf32> to vector<8x384xf32>
    %23 = arith.negf %22 : vector<8x384xf32>
    %24 = math.exp %23 : vector<8x384xf32>
    %cst_20 = arith.constant 1.000000e+00 : f32
    %25 = vector.broadcast %cst_20 : f32 to vector<8x384xf32>
    %26 = arith.addf %25, %24 : vector<8x384xf32>
    %27 = arith.divf %25, %26 : vector<8x384xf32>
    %28 = vector.extract_strided_slice %27 {offsets = [0, 0], sizes = [8, 128], strides = [1, 1]} : vector<8x384xf32> to vector<8x128xf32>
    %29 = vector.extract_strided_slice %27 {offsets = [0, 128], sizes = [8, 128], strides = [1, 1]} : vector<8x384xf32> to vector<8x128xf32>
    %30 = vector.extract_strided_slice %27 {offsets = [0, 256], sizes = [8, 128], strides = [1, 1]} : vector<8x384xf32> to vector<8x128xf32>
    %31 = vector.extract_strided_slice %21 {offsets = [0, 384], sizes = [8, 128], strides = [1, 1]} : vector<8x512xf32> to vector<8x128xf32>
    %32 = math.tanh %31 : vector<8x128xf32>
    %33 = arith.mulf %29, %15 : vector<8x128xf32>
    %34 = arith.mulf %28, %32 : vector<8x128xf32>
    %35 = arith.addf %33, %34 : vector<8x128xf32>
    %36 = math.tanh %35 : vector<8x128xf32>
    %37 = arith.mulf %30, %36 : vector<8x128xf32>
    %38 = arith.index_cast %17 : i32 to index
    %c0_21 = arith.constant 0 : index
    %39 = vector.load %arg14[%38, %c0_21] : memref<32x128xf32, #tpu.memory_space<vmem>>, vector<8x128xf32>
    tpu.vector_store %arg14[%38, %c0_21], %37 {strides = array<i32>} : memref<32x128xf32, #tpu.memory_space<vmem>>, vector<8x128xf32>,
    %c1_i32 = arith.constant 1 : i32
    %c8_i32_22 = arith.constant 8 : i32
    %40 = arith.muli %c1_i32, %c8_i32_22 : i32
    %41 = tpu.assume_multiple %40, 8 : i32
    %42 = arith.index_cast %41 : i32 to index
    %c0_23 = arith.constant 0 : index
    %43 = vector.load %arg13[%42, %c0_23] : memref<32x512xf32, #tpu.memory_space<vmem>>, vector<8x512xf32>
    %cst_24 = arith.constant dense<0.000000e+00> : vector<8x512xf32>
    %44 = tpu.matmul %37, %11, %cst_24 {dimension_numbers = #tpu.dot_dimension_numbers<[1], [0], [0], [1], [0, 0, 1, 1], [], []>} : vector<8x128xf32>, vector<128x512xf32>, vector<8x512xf32> -> vector<8x512xf32>
    %45 = arith.addf %43, %44 : vector<8x512xf32>
    %46 = vector.extract_strided_slice %45 {offsets = [0, 0], sizes = [8, 384], strides = [1, 1]} : vector<8x512xf32> to vector<8x384xf32>
    %47 = arith.negf %46 : vector<8x384xf32>
    %48 = math.exp %47 : vector<8x384xf32>
    %cst_25 = arith.constant 1.000000e+00 : f32
    %49 = vector.broadcast %cst_25 : f32 to vector<8x384xf32>
    %50 = arith.addf %49, %48 : vector<8x384xf32>
    %51 = arith.divf %49, %50 : vector<8x384xf32>
    %52 = vector.extract_strided_slice %51 {offsets = [0, 0], sizes = [8, 128], strides = [1, 1]} : vector<8x384xf32> to vector<8x128xf32>
    %53 = vector.extract_strided_slice %51 {offsets = [0, 128], sizes = [8, 128], strides = [1, 1]} : vector<8x384xf32> to vector<8x128xf32>
    %54 = vector.extract_strided_slice %51 {offsets = [0, 256], sizes = [8, 128], strides = [1, 1]} : vector<8x384xf32> to vector<8x128xf32>
    %55 = vector.extract_strided_slice %45 {offsets = [0, 384], sizes = [8, 128], strides = [1, 1]} : vector<8x512xf32> to vector<8x128xf32>
    %56 = math.tanh %55 : vector<8x128xf32>
    %57 = arith.mulf %53, %35 : vector<8x128xf32>
    %58 = arith.mulf %52, %56 : vector<8x128xf32>
    %59 = arith.addf %57, %58 : vector<8x128xf32>
    %60 = math.tanh %59 : vector<8x128xf32>
    %61 = arith.mulf %54, %60 : vector<8x128xf32>
    %62 = arith.index_cast %41 : i32 to index
    %c0_26 = arith.constant 0 : index
    %63 = vector.load %arg14[%62, %c0_26] : memref<32x128xf32, #tpu.memory_space<vmem>>, vector<8x128xf32>
    tpu.vector_store %arg14[%62, %c0_26], %61 {strides = array<i32>} : memref<32x128xf32, #tpu.memory_space<vmem>>, vector<8x128xf32>,
    %c2_i32 = arith.constant 2 : i32
    %c8_i32_27 = arith.constant 8 : i32
    %64 = arith.muli %c2_i32, %c8_i32_27 : i32
    %65 = tpu.assume_multiple %64, 8 : i32
    %66 = arith.index_cast %65 : i32 to index
    %c0_28 = arith.constant 0 : index
    %67 = vector.load %arg13[%66, %c0_28] : memref<32x512xf32, #tpu.memory_space<vmem>>, vector<8x512xf32>
    %cst_29 = arith.constant dense<0.000000e+00> : vector<8x512xf32>
    %68 = tpu.matmul %61, %11, %cst_29 {dimension_numbers = #tpu.dot_dimension_numbers<[1], [0], [0], [1], [0, 0, 1, 1], [], []>} : vector<8x128xf32>, vector<128x512xf32>, vector<8x512xf32> -> vector<8x512xf32>
    %69 = arith.addf %67, %68 : vector<8x512xf32>
    %70 = vector.extract_strided_slice %69 {offsets = [0, 0], sizes = [8, 384], strides = [1, 1]} : vector<8x512xf32> to vector<8x384xf32>
    %71 = arith.negf %70 : vector<8x384xf32>
    %72 = math.exp %71 : vector<8x384xf32>
    %cst_30 = arith.constant 1.000000e+00 : f32
    %73 = vector.broadcast %cst_30 : f32 to vector<8x384xf32>
    %74 = arith.addf %73, %72 : vector<8x384xf32>
    %75 = arith.divf %73, %74 : vector<8x384xf32>
    %76 = vector.extract_strided_slice %75 {offsets = [0, 0], sizes = [8, 128], strides = [1, 1]} : vector<8x384xf32> to vector<8x128xf32>
    %77 = vector.extract_strided_slice %75 {offsets = [0, 128], sizes = [8, 128], strides = [1, 1]} : vector<8x384xf32> to vector<8x128xf32>
    %78 = vector.extract_strided_slice %75 {offsets = [0, 256], sizes = [8, 128], strides = [1, 1]} : vector<8x384xf32> to vector<8x128xf32>
    %79 = vector.extract_strided_slice %69 {offsets = [0, 384], sizes = [8, 128], strides = [1, 1]} : vector<8x512xf32> to vector<8x128xf32>
    %80 = math.tanh %79 : vector<8x128xf32>
    %81 = arith.mulf %77, %59 : vector<8x128xf32>
    %82 = arith.mulf %76, %80 : vector<8x128xf32>
    %83 = arith.addf %81, %82 : vector<8x128xf32>
    %84 = math.tanh %83 : vector<8x128xf32>
    %85 = arith.mulf %78, %84 : vector<8x128xf32>
    %86 = arith.index_cast %65 : i32 to index
    %c0_31 = arith.constant 0 : index
    %87 = vector.load %arg14[%86, %c0_31] : memref<32x128xf32, #tpu.memory_space<vmem>>, vector<8x128xf32>
    tpu.vector_store %arg14[%86, %c0_31], %85 {strides = array<i32>} : memref<32x128xf32, #tpu.memory_space<vmem>>, vector<8x128xf32>,
    %c3_i32 = arith.constant 3 : i32
    %c8_i32_32 = arith.constant 8 : i32
    %88 = arith.muli %c3_i32, %c8_i32_32 : i32
    %89 = tpu.assume_multiple %88, 8 : i32
    %90 = arith.index_cast %89 : i32 to index
    %c0_33 = arith.constant 0 : index
    %91 = vector.load %arg13[%90, %c0_33] : memref<32x512xf32, #tpu.memory_space<vmem>>, vector<8x512xf32>
    %cst_34 = arith.constant dense<0.000000e+00> : vector<8x512xf32>
    %92 = tpu.matmul %85, %11, %cst_34 {dimension_numbers = #tpu.dot_dimension_numbers<[1], [0], [0], [1], [0, 0, 1, 1], [], []>} : vector<8x128xf32>, vector<128x512xf32>, vector<8x512xf32> -> vector<8x512xf32>
    %93 = arith.addf %91, %92 : vector<8x512xf32>
    %94 = vector.extract_strided_slice %93 {offsets = [0, 0], sizes = [8, 384], strides = [1, 1]} : vector<8x512xf32> to vector<8x384xf32>
    %95 = arith.negf %94 : vector<8x384xf32>
    %96 = math.exp %95 : vector<8x384xf32>
    %cst_35 = arith.constant 1.000000e+00 : f32
    %97 = vector.broadcast %cst_35 : f32 to vector<8x384xf32>
    %98 = arith.addf %97, %96 : vector<8x384xf32>
    %99 = arith.divf %97, %98 : vector<8x384xf32>
    %100 = vector.extract_strided_slice %99 {offsets = [0, 0], sizes = [8, 128], strides = [1, 1]} : vector<8x384xf32> to vector<8x128xf32>
    %101 = vector.extract_strided_slice %99 {offsets = [0, 128], sizes = [8, 128], strides = [1, 1]} : vector<8x384xf32> to vector<8x128xf32>
    %102 = vector.extract_strided_slice %99 {offsets = [0, 256], sizes = [8, 128], strides = [1, 1]} : vector<8x384xf32> to vector<8x128xf32>
    %103 = vector.extract_strided_slice %93 {offsets = [0, 384], sizes = [8, 128], strides = [1, 1]} : vector<8x512xf32> to vector<8x128xf32>
    %104 = math.tanh %103 : vector<8x128xf32>
    %105 = arith.mulf %101, %83 : vector<8x128xf32>
    %106 = arith.mulf %100, %104 : vector<8x128xf32>
    %107 = arith.addf %105, %106 : vector<8x128xf32>
    %108 = math.tanh %107 : vector<8x128xf32>
    %109 = arith.mulf %102, %108 : vector<8x128xf32>
    %110 = arith.index_cast %89 : i32 to index
    %c0_36 = arith.constant 0 : index
    %111 = vector.load %arg14[%110, %c0_36] : memref<32x128xf32, #tpu.memory_space<vmem>>, vector<8x128xf32>
    tpu.vector_store %arg14[%110, %c0_36], %109 {strides = array<i32>} : memref<32x128xf32, #tpu.memory_space<vmem>>, vector<8x128xf32>,
    %c4_i32 = arith.constant 4 : i32
    %c0_37 = arith.constant 0 : index
    %c0_38 = arith.constant 0 : index
    %c0_39 = arith.constant 0 : index
    %112 = vector.load %arg11[%c0_37, %c0_38, %c0_39] : memref<1x8x128xf32, #tpu.memory_space<vmem>>, vector<1x8x128xf32>
    %113 = vector.shape_cast %112 : vector<1x8x128xf32> to vector<8x128xf32>
    %114 = vector.shape_cast %109 : vector<8x128xf32> to vector<1x8x128xf32>
    tpu.vector_store %arg11[%c0_37, %c0_38, %c0_39], %114 {strides = array<i32>} : memref<1x8x128xf32, #tpu.memory_space<vmem>>, vector<1x8x128xf32>,
    %c0_40 = arith.constant 0 : index
    %c0_41 = arith.constant 0 : index
    %c0_42 = arith.constant 0 : index
    %115 = vector.load %arg12[%c0_40, %c0_41, %c0_42] : memref<1x8x128xf32, #tpu.memory_space<vmem>>, vector<1x8x128xf32>
    %116 = vector.shape_cast %115 : vector<1x8x128xf32> to vector<8x128xf32>
    %117 = vector.shape_cast %107 : vector<8x128xf32> to vector<1x8x128xf32>
    tpu.vector_store %arg12[%c0_40, %c0_41, %c0_42], %117 {strides = array<i32>} : memref<1x8x128xf32, #tpu.memory_space<vmem>>, vector<1x8x128xf32>,
    %c0_43 = arith.constant 0 : index
    %c0_44 = arith.constant 0 : index
    %118 = vector.load %arg14[%c0_43, %c0_44] : memref<32x128xf32, #tpu.memory_space<vmem>>, vector<32x128xf32>
    %c0_45 = arith.constant 0 : index
    %c0_46 = arith.constant 0 : index
    %119 = vector.load %arg8[%c0_45, %c0_46] : memref<128x128xf32, #tpu.memory_space<vmem>>, vector<128x128xf32>
    %cst_47 = arith.constant dense<0.000000e+00> : vector<32x128xf32>
    %120 = tpu.matmul %118, %119, %cst_47 {dimension_numbers = #tpu.dot_dimension_numbers<[1], [0], [0], [1], [0, 0, 1, 1], [], []>} : vector<32x128xf32>, vector<128x128xf32>, vector<32x128xf32> -> vector<32x128xf32>
    %c0_48 = arith.constant 0 : index
    %c0_49 = arith.constant 0 : index
    %121 = vector.load %arg9[%c0_48, %c0_49] : memref<1x128xf32, #tpu.memory_space<vmem>>, vector<1x128xf32>
    %122 = vector.broadcast %121 : vector<1x128xf32> to vector<32x128xf32>
    %123 = arith.addf %120, %122 : vector<32x128xf32>
    %124 = vector.extract_strided_slice %123 {offsets = [0, 0], sizes = [32, 20], strides = [1, 1]} : vector<32x128xf32> to vector<32x20xf32>
    %125 = vector.extract_strided_slice %123 {offsets = [0, 20], sizes = [32, 20], strides = [1, 1]} : vector<32x128xf32> to vector<32x20xf32>
    %126 = vector.extract_strided_slice %123 {offsets = [0, 40], sizes = [32, 20], strides = [1, 1]} : vector<32x128xf32> to vector<32x20xf32>
    %127 = math.exp %126 : vector<32x20xf32>
    %128 = vector.extract_strided_slice %124 {offsets = [0, 0], sizes = [32, 4], strides = [1, 1]} : vector<32x20xf32> to vector<32x4xf32>
    %129 = vector.extract_strided_slice %124 {offsets = [0, 4], sizes = [32, 4], strides = [1, 1]} : vector<32x20xf32> to vector<32x4xf32>
    %130 = vector.extract_strided_slice %124 {offsets = [0, 8], sizes = [32, 4], strides = [1, 1]} : vector<32x20xf32> to vector<32x4xf32>
    %131 = vector.extract_strided_slice %124 {offsets = [0, 12], sizes = [32, 4], strides = [1, 1]} : vector<32x20xf32> to vector<32x4xf32>
    %132 = vector.extract_strided_slice %124 {offsets = [0, 16], sizes = [32, 4], strides = [1, 1]} : vector<32x20xf32> to vector<32x4xf32>
    %133 = arith.maximumf %128, %129 : vector<32x4xf32>
    %134 = arith.maximumf %133, %130 : vector<32x4xf32>
    %135 = arith.maximumf %134, %131 : vector<32x4xf32>
    %136 = arith.maximumf %135, %132 : vector<32x4xf32>
    %137 = arith.subf %128, %136 : vector<32x4xf32>
    %138 = math.exp %137 : vector<32x4xf32>
    %139 = arith.subf %129, %136 : vector<32x4xf32>
    %140 = math.exp %139 : vector<32x4xf32>
    %141 = arith.subf %130, %136 : vector<32x4xf32>
    %142 = math.exp %141 : vector<32x4xf32>
    %143 = arith.subf %131, %136 : vector<32x4xf32>
    %144 = math.exp %143 : vector<32x4xf32>
    %145 = arith.subf %132, %136 : vector<32x4xf32>
    %146 = math.exp %145 : vector<32x4xf32>
    %147 = arith.addf %138, %140 : vector<32x4xf32>
    %148 = arith.addf %147, %142 : vector<32x4xf32>
    %149 = arith.addf %148, %144 : vector<32x4xf32>
    %150 = arith.addf %149, %146 : vector<32x4xf32>
    %cst_50 = arith.constant 1.000000e+00 : f32
    %151 = vector.broadcast %cst_50 : f32 to vector<32x4xf32>
    %152 = arith.divf %151, %150 : vector<32x4xf32>
    %153 = arith.mulf %138, %152 : vector<32x4xf32>
    %154 = arith.mulf %140, %152 : vector<32x4xf32>
    %155 = arith.mulf %142, %152 : vector<32x4xf32>
    %156 = arith.mulf %144, %152 : vector<32x4xf32>
    %157 = arith.mulf %146, %152 : vector<32x4xf32>
    %158 = tpu.concatenate %153, %154, %155, %156, %157 in 1 : vector<32x4xf32>, vector<32x4xf32>, vector<32x4xf32>, vector<32x4xf32>, vector<32x4xf32> -> vector<32x20xf32>
    %cst_51 = arith.constant 0.000000e+00 : f32
    %159 = vector.broadcast %cst_51 : f32 to vector<32x68xf32>
    %160 = tpu.concatenate %158, %125, %127, %159 in 1 : vector<32x20xf32>, vector<32x20xf32>, vector<32x20xf32>, vector<32x68xf32> -> vector<32x128xf32>
    %c0_52 = arith.constant 0 : index
    %c0_53 = arith.constant 0 : index
    %c0_54 = arith.constant 0 : index
    %161 = vector.load %arg10[%c0_52, %c0_53, %c0_54] : memref<1x32x128xf32, #tpu.memory_space<vmem>>, vector<1x32x128xf32>
    %162 = vector.shape_cast %161 : vector<1x32x128xf32> to vector<32x128xf32>
    %163 = vector.shape_cast %160 : vector<32x128xf32> to vector<1x32x128xf32>
    tpu.vector_store %arg10[%c0_52, %c0_53, %c0_54], %163 {strides = array<i32>} : memref<1x32x128xf32, #tpu.memory_space<vmem>>, vector<1x32x128xf32>,
    return
  }
  func.func @transform_0(%arg0: i32, %arg1: i32) -> (i32, i32, i32) {
    %c0_i32 = arith.constant 0 : i32
    %c0_i32_0 = arith.constant 0 : i32
    return %arg0, %arg1, %c0_i32 : i32, i32, i32
  }
  func.func @transform_1(%arg0: i32, %arg1: i32) -> (i32, i32, i32) {
    %c0_i32 = arith.constant 0 : i32
    %c0_i32_0 = arith.constant 0 : i32
    %c0_i32_1 = arith.constant 0 : i32
    return %arg0, %c0_i32, %c0_i32_0 : i32, i32, i32
  }
  func.func @transform_2(%arg0: i32, %arg1: i32) -> (i32, i32, i32) {
    %c0_i32 = arith.constant 0 : i32
    %c0_i32_0 = arith.constant 0 : i32
    %c0_i32_1 = arith.constant 0 : i32
    return %arg0, %c0_i32, %c0_i32_0 : i32, i32, i32
  }
  func.func @transform_3(%arg0: i32, %arg1: i32) -> (i32, i32) {
    %c0_i32 = arith.constant 0 : i32
    %c0_i32_0 = arith.constant 0 : i32
    %c0_i32_1 = arith.constant 0 : i32
    return %c0_i32, %c0_i32_0 : i32, i32
  }
  func.func @transform_4(%arg0: i32, %arg1: i32) -> (i32, i32) {
    %c0_i32 = arith.constant 0 : i32
    %c0_i32_0 = arith.constant 0 : i32
    %c0_i32_1 = arith.constant 0 : i32
    return %c0_i32, %c0_i32_0 : i32, i32
  }
  func.func @transform_5(%arg0: i32, %arg1: i32) -> (i32, i32) {
    %c0_i32 = arith.constant 0 : i32
    %c0_i32_0 = arith.constant 0 : i32
    %c0_i32_1 = arith.constant 0 : i32
    return %c0_i32, %c0_i32_0 : i32, i32
  }
  func.func @transform_6(%arg0: i32, %arg1: i32) -> (i32, i32) {
    %c0_i32 = arith.constant 0 : i32
    %c0_i32_0 = arith.constant 0 : i32
    %c0_i32_1 = arith.constant 0 : i32
    return %c0_i32, %c0_i32_0 : i32, i32
  }
  func.func @transform_7(%arg0: i32, %arg1: i32) -> (i32, i32) {
    %c0_i32 = arith.constant 0 : i32
    %c0_i32_0 = arith.constant 0 : i32
    %c0_i32_1 = arith.constant 0 : i32
    return %c0_i32, %c0_i32_0 : i32, i32
  }
  func.func @transform_8(%arg0: i32, %arg1: i32) -> (i32, i32, i32) {
    %c0_i32 = arith.constant 0 : i32
    %c0_i32_0 = arith.constant 0 : i32
    return %arg0, %arg1, %c0_i32 : i32, i32, i32
  }
  func.func @transform_9(%arg0: i32, %arg1: i32) -> (i32, i32, i32) {
    %c0_i32 = arith.constant 0 : i32
    %c0_i32_0 = arith.constant 0 : i32
    %c0_i32_1 = arith.constant 0 : i32
    return %arg0, %c0_i32, %c0_i32_0 : i32, i32, i32
  }
  func.func @transform_10(%arg0: i32, %arg1: i32) -> (i32, i32, i32) {
    %c0_i32 = arith.constant 0 : i32
    %c0_i32_0 = arith.constant 0 : i32
    %c0_i32_1 = arith.constant 0 : i32
    return %arg0, %c0_i32, %c0_i32_0 : i32, i32, i32
  }
}

</mosaic_0001>

<bundles_post_ra>
// kernel: tpu_custom_call.1
= control target key start
LH: loop header
LB: loop body
LE: loop exit
PB: predicated region body
PF: predicated region fallthrough
CT: control target
= control target key end

     0   :  { %16 = vsyncpa [#allocation5], 0  ;;  %s3925_s0 = inlined_call_operand.vmem [shape: f32[1,64,4], index: 0, kind: input, shape index: {}]   ;;  %s3926_s1 = inlined_call_operand.vmem [shape: f32[1,8,128], index: 1, kind: input, shape index: {}]   ;;  %s3927_s2 = inlined_call_operand.vmem [shape: f32[1,8,128], index: 2, kind: input, shape index: {}]   ;;  %s3928_s3 = inlined_call_operand.vmem [shape: f32[4,512], index: 3, kind: input, shape index: {}]   ;;  %s3929_s4 = inlined_call_operand.hbm [shape: f32[128,512], index: 4, kind: input, shape index: {}]   ;;  %s3930_s5 = inlined_call_operand.vmem [shape: f32[1,512], index: 5, kind: input, shape index: {}]   ;;  %s3931_s6 = inlined_call_operand.hbm [shape: f32[128,128], index: 6, kind: input, shape index: {}]   ;;  %s3932_s7 = inlined_call_operand.vmem [shape: f32[1,128], index: 7, kind: input, shape index: {}]   ;;  %s3933_s8 = inlined_call_operand.hbm [shape: f32[1,64,128], index: 8, kind: output, shape index: {0}]   ;;  %s3934_s9 = inlined_call_operand.hbm [shape: f32[1,8,128], index: 9, kind: output, shape index: {1}]   ;;  %s3935_s10 = inlined_call_operand.hbm [shape: f32[1,8,128], index: 10, kind: output, shape index: {2}]  }
   0x1   :  { %17 = vsyncpa [#allocation8], 0 }
   0x2   :  { %18 = vsyncpa [#allocation6], 0 }
   0x3   :  { %20 = vsyncpa [#allocation6 + $0x1], 0 }
   0x4   :  { %21 = vsyncpa [#allocation11], 0  ;;  %s3125_s13 = smov 0   ;;  %s3127_s14 = smov 0  }
   0x5   :  { %s3129_s15 = smov 0   ;;  %s3131_s16 = smov 0  }
   0x6   :  { %s3133_s17 = smov 0   ;;  %s3135_s18 = smov 0  }
   0x7 LB: > { %3949 = sst [smem:[#allocation17_spill]] %s3029_s13  ;;  %s2197_s19 = sadd.s32 4294967295, %s3049_s18   ;;  %s3049_s18 = sphi %s3135_s18, %s27_s18   ;;  %s3045_s17 = sphi %s3133_s17, %s3973_s17   ;;  %s3041_s16 = sphi %s3131_s16, %s3972_s16   ;;  %s3037_s15 = sphi %s3129_s15, %s3971_s15   ;;  %s3033_s14 = sphi %s3127_s14, %s3975_s14   ;;  %s3029_s13 = sphi %s3125_s13, %s3974_s13  }
   0x8   : > { %3950 = sst [smem:[#allocation18_spill]] %s3037_s15  ;;  %s2198_s20 = sadd.s32 4294967294, %s3049_s18  }
   0x9   : > { %3951 = sst [smem:[#allocation19_spill]] %s3045_s17  ;;  %s36_s21 = sadd.s32 1, %s3045_s17 }
   0xa   : > { %3952 = sst [smem:[#allocation20_spill]] %s3049_s18  ;;  %s233_s22 = sadd.s32 1, %s3037_s15 }
   0xb   : > { %p37_p0 = scmp.ge.s32.totalorder %s36_s21, 2  ;;  %p243_p1 = scmp.ne.s32.totalorder %s3037_s15, %s3033_s14 }
   0xc   : > { %p3161_p2 = scmp.eq.s32.totalorder %s2197_s19, 1  ;;  %p249_p3 = scmp.ne.s32.totalorder %s3033_s14, %s3029_s13 }
   0xd   : > { %s3977_s21 = smov (%p37_p0, %s36_s21), 0  ;;  %p250_p5 = scmp.eq.s32.totalorder %s2198_s20, 1 }
   0xe   : > { %s3953_s23 = scalar_select %p3161_p2, 1, 0 }
   0xf   : > { %3954 = sst [smem:[#allocation21_spill]] %s3977_s21  ;;  %p3171_p4 = por %p3161_p2, %p243_p1 }
  0x10   : > { %s229_s25 = ssub.s32 %s3045_s17, %s3977_s21  ;;  %p2199_p6 = scmp.ge.s32.totalorder %s3049_s18, 1 }
  0x11   : > { %s3955_s24 = scalar_select %p3171_p4, 1, 0 }
  0x12   : > { %p231_p7 = scmp.eq.s32.totalorder %s229_s25, 0  ;;  %p3178_p8 = por %p250_p5, %p249_p3 }
  0x13   : > { %p309_p9 = scmp.lt.s32.totalorder %s3049_s18, 3  ;;  %p3190_p11 = scmp.eq.s32.totalorder %s2197_s19, 0 }
  0x14   : > { %s3956_s26 = scalar_select %p3178_p8, 1, 0 }
  0x15   : > { %s3184_s27 = scalar_select %p231_p7, %s3037_s15, %s233_s22  }
  0x16   : > { %3957 = sst [smem:[#allocation22_spill]] %s3956_s26  ;;  %p3186_p10 = pnand %p2199_p6, %p309_p9 }
  0x17   : > { %3958 = sst [smem:[#allocation23_spill]] %s3184_s27  ;;  %s3051_s30 = smov [#allocation4]  }
  0x18   : > { %s3959_s28 = scalar_select %p3186_p10, 1, 0 }
  0x19   : > { %s3960_s29 = scalar_select %p3190_p11, 1, 0 }
  0x1a   : > { %p2643_p12 = pneg %p3186_p10  ;;  %s338_s11 = sshll.u32 %s3051_s30, 4  ;;  %s339_s11 = int_to_ptr.vmem [resolvable:$true] %s338_s11 }
  0x1b   : > { %s3052_s20 = smov [#allocation7]   ;;  %s2851_s21 = scalar_lea.hbm %s3929_s4, 8192 }
  0x1c   : > { %p3198_p13 = pnand %p3190_p11, %p2643_p12  ;;  %s354_s22 = sshll.u32 %s3052_s20, 4  ;;  %s3202_s22 = int_to_ptr.vmem [resolvable:$true] %s354_s22 }
  0x1d   : > { %p2852_p0 = scmp.ne.s32.totalorder %s3929_s4, %s2851_s21  ;;  %p2858_p6 = scmp.lt.u32.totalorder %s2851_s21, %s3929_s4 }
  0x1e   : > { %p2853_p1 = pneg %p3198_p13 }
  0x20   : > { %p2854_p3 = pnand %p2853_p1, %p2852_p0 }
  0x22   : > { %p2855_p5 = pneg %p2854_p3 }
  0x24   : > { %p2860_p7 = pnand %p2858_p6, %p2855_p5 }
  0x26   : > { %2863 = shalt.err (!%p2860_p7)
}
  0x27   : > { %s2864_s20 = scalar_lea.vmem %s339_s11, 8192  ;;  %p2872_p4 = scmp.lt.s32.totalorder %s339_s11, %s339_s11 }
  0x28   : > { %p2865_p9 = scmp.ne.s32.totalorder %s339_s11, %s2864_s20  ;;  %p2873_p2 = scmp.lt.s32.totalorder %s2864_s20, %s2864_s20 }
  0x2a   : > { %p2867_p12 = pnand %p2865_p9, %p2853_p1  ;;  %p2874_p11 = por %p2873_p2, %p2872_p4 }
  0x2c   : > { %p2868_p8 = pneg %p2867_p12 }
  0x2e   : > { %p2875_p10 = pnand %p2874_p11, %p2868_p8 }
  0x30   : > { %2878 = shalt.err (!%p2875_p10)
}
  0x31   : > { %s3053_s17 = smov 512   ;;  %s3054_s27 = smov 32  }
  0x32   : > { %2646 = dma.hbm_to_vmem [thread:$0]  (!%p3198_p13), %s3929_s4, 8192, %s339_s11, [#allocation5], %s3053_s17, %s3053_s17, %s3054_s27  }
  0x33   : > { %s2879_s30 = scalar_lea.hbm %s3931_s6, 2048 }
  0x34   : > { %p2880_p0 = scmp.ne.s32.totalorder %s3931_s6, %s2879_s30  ;;  %p2886_p8 = scmp.lt.u32.totalorder %s2879_s30, %s3931_s6 }
  0x36   : > { %p2882_p2 = pnand %p2880_p0, %p2853_p1 }
  0x38   : > { %p2883_p4 = pneg %p2882_p2 }
  0x3a   : > { %p2888_p10 = pnand %p2886_p8, %p2883_p4 }
  0x3c   : > { %2891 = shalt.err (!%p2888_p10)
}
  0x3d   : > { %s2892_s11 = scalar_lea.vmem %s3202_s22, 2048  ;;  %p2900_p6 = scmp.lt.s32.totalorder %s3202_s22, %s3202_s22 }
  0x3e   : > { %p2893_p11 = scmp.ne.s32.totalorder %s3202_s22, %s2892_s11  ;;  %p2901_p7 = scmp.lt.s32.totalorder %s2892_s11, %s2892_s11 }
  0x40   : > { %p2895_p3 = pnand %p2893_p11, %p2853_p1  ;;  %p2902_p9 = por %p2901_p7, %p2900_p6 }
  0x42   : > { %p2896_p5 = pneg %p2895_p3 }
  0x44   : > { %p2903_p12 = pnand %p2902_p9, %p2896_p5 }
  0x46   : > { %2906 = shalt.err (!%p2903_p12)
}
  0x47   : > { %s3055_s13 = smov 128   ;;  %s3056_s18 = smov 8  }
  0x48   : > { %2649 = dma.hbm_to_vmem [thread:$0]  (!%p3198_p13), %s3931_s6, 2048, %s3202_s22, [#allocation8], %s3055_s13, %s3055_s13, %s3056_s18  }
  0x49   : > { %p3962_p0 = scmp.ne.s32.totalorder %s3959_s28, 0 }
  0x4a   : > { %p3963_p1 = scmp.ne.s32.totalorder (!%p3962_p0), %s3960_s29, 0 }
  0x4b   : > { %386 = sbr.rel (%p3962_p0) target bundleno = 1993 (0x7c9), region = 52 }
  0x52   : > { %3012 = dma.done.wait (%p3963_p1), [#allocation5], 8192  }
  0x53   : > { %3014 = vsyncadd (%p3963_p1), [#allocation5], 4294959104 }
  0x54   : > { %3016 = dma.done.wait (%p3963_p1), [#allocation8], 2048  }
  0x55   : > { %3018 = vsyncadd (%p3963_p1), [#allocation8], 4294965248  ;;  %s433_s12 = sand.u32 1, %s3033_s14   ;;  %s2209_s22 = sshll.u32 %s3041_s16, 2 }
  0x56   : > { %s2208_s28 = sshll.u32 %s433_s12, 5  ;;  %p443_p13 = scmp.lt.s32.totalorder %s2209_s22, 7 }
  0x57   : > { %s3270_s25 = scalar_lea.vmem [#allocation9], %s2208_s28  ;;  %p2211_p2 = scmp.ne.s32.totalorder %s3041_s16, 0 }
  0x58   : > { %s3979_s22 = smov (!%p443_p13, %s2209_s22), 7  ;;  %v463_v0 = vld [vmem:[%s3926_s1] sm:$0xff] (!%p2211_p2) }
  0x59   : > { %s2210_s27 = sshll.u32 %s3979_s22, 3  ;;  %462 = sbr.rel (%p2211_p2) target bundleno = 96 (0x60), region = 64  ;;  %v465_v1 = vld [vmem:[%s3927_s2] sm:$0xff] (!%p2211_p2)  ;;  %464 = vst [vmem:[#allocation10] sm:$0xff] (!%p2211_p2), %v463_v0 }
  0x5a   : > { %s3268_s19 = scalar_lea.vmem %s3925_s0, %s2210_s27  ;;  %466 = vst [vmem:[#allocation12] sm:$0xff] (!%p2211_p2), %v465_v1 }
  0x60 PF: > { %v716_v2 = vld [vmem:[#allocation4 + $0x8] sm:$0xff]  ;;  %v715_v4 = vld [vmem:[#allocation4] sm:$0xff]  ;;  %v3057_v9 = vmov 0.0   ;;  %vm512_vm0 = vcmask 1043456   ;;  %vm499_vm1 = vcmask 31744   ;;  %v469_v47 = vld [vmem:[%s3268_s19 + $0x10] sm:$0xff] }
  0x61   : > { %v720_v3 = vld [vmem:[#allocation4 + $0x28] sm:$0xff]  ;;  %v719_v6 = vld [vmem:[#allocation4 + $0x20] sm:$0xff]  ;;  %585 = vmatprep.mubr.f32.mxu0 %v3057_v9  ;;  %852 = vmatprep.mubr.f32.mxu1 %v3057_v9  ;;  %v470_v54 = vld [vmem:[%s3268_s19 + $0x18] sm:$0xff]  ;;  %s3058_s21 = smov 120   ;;  %s3060_s29 = smov 116   ;;  %vm1962_vm2 = vcmask 64512  }
  0x62   : > { %v3279_v5 = vpack.c.bf16 %v720_v3, %v716_v2  ;;  %v724_v7 = vld [vmem:[#allocation4 + $0x48] sm:$0xff]  ;;  %v3283_v10 = vpack.c.bf16 %v719_v6, %v715_v4  ;;  %v723_v12 = vld [vmem:[#allocation4 + $0x40] sm:$0xff]  ;;  %v718_v58 = vld [vmem:[#allocation4 + $0x18] sm:$0xff]  ;;  %s3061_s30 = smov 112   ;;  %s3062_s20 = smov 4   ;;  %vm1967_vm3 = vcmask 97280  }
  0x63   : > { %v728_v8 = vld [vmem:[#allocation4 + $0x68] sm:$0xff]  ;;  %v727_v13 = vld [vmem:[#allocation4 + $0x60] sm:$0xff]  ;;  %v722_v59 = vld [vmem:[#allocation4 + $0x38] sm:$0xff]  ;;  %s3063_s11 = smov 8   ;;  %s3064_s13 = smov 12   ;;  %vm1972_vm4 = vcmask 130048  }
  0x64   : > { %v3285_v11 = vpack.c.bf16 %v728_v8, %v724_v7  ;;  %v732_v14 = vld [vmem:[#allocation4 + $0x88] sm:$0xff]  ;;  %2306 = vmatprep.subr.bf16.mxu1 %v3279_v5  ;;  %v3289_v16 = vpack.c.bf16 %v727_v13, %v723_v12  ;;  %v731_v18 = vld [vmem:[#allocation4 + $0x80] sm:$0xff]  ;;  %v3351_v61 = vpack.c.bf16 %v722_v59, %v718_v58  ;;  %v717_v62 = vld [vmem:[#allocation4 + $0x10] sm:$0xff]  ;;  %s3065_s18 = smov 16   ;;  %vm1977_vm5 = vcmask 162816   ;;  %s3066_s26 = smov [#allocation10]  }
  0x65   : > { %v736_v15 = vld [vmem:[#allocation4 + $0xa8] sm:$0xff]  ;;  %2308 = vmatpush1.bf16.msra.mxu1 %v3283_v10  ;;  %v735_v19 = vld [vmem:[#allocation4 + $0xa0] sm:$0xff]  ;;  %v721_v63 = vld [vmem:[#allocation4 + $0x30] sm:$0xff]  ;;  %vm1982_vm6 = vcmask 326656   ;;  %vm1987_vm7 = vcmask 490496   ;;  %s2028_s17 = sshll.u32 %s3066_s26, 4  ;;  %s2029_s17 = int_to_ptr.vmem [resolvable:$true] %s2028_s17 }
  0x66   : > { %2310 = vmatprep.subr.bf16.mxu1 %v3285_v11  ;;  %v3292_v17 = vpack.c.bf16 %v736_v15, %v732_v14  ;;  %v740_v20 = vld [vmem:[#allocation4 + $0xc8] sm:$0xff]  ;;  %v3295_v22 = vpack.c.bf16 %v735_v19, %v731_v18  ;;  %v739_v24 = vld [vmem:[#allocation4 + $0xc0] sm:$0xff]  ;;  %v726_v0 = vld [vmem:[#allocation4 + $0x58] sm:$0xff]  ;;  %v3357_v3 = vpack.c.bf16 %v721_v63, %v717_v62  ;;  %s2907_s22 = scalar_lea.vmem %s2029_s17, 128  ;;  %p3964_p8 = scmp.ne.s32.totalorder %s3953_s23, 0 }
  0x67   : > { %v744_v21 = vld [vmem:[#allocation4 + $0xe8] sm:$0xff]  ;;  %v743_v25 = vld [vmem:[#allocation4 + $0xe0] sm:$0xff]  ;;  %v730_v1 = vld [vmem:[#allocation4 + $0x78] sm:$0xff]  ;;  %p2908_p4 = scmp.ne.s32.totalorder %s2029_s17, %s2907_s22  ;;  %p2914_p3 = scmp.lt.s32.totalorder %s2029_s17, %s2029_s17 }
  0x68   : > { %v3298_v23 = vpack.c.bf16 %v744_v21, %v740_v20  ;;  %v471_v26 = vld [vmem:[%s3928_s3] sm:$0xff]  ;;  %v748_v27 = vld [vmem:[#allocation4 + $0x108] sm:$0xff]  ;;  %v3305_v31 = vpack.c.bf16 %v743_v25, %v739_v24  ;;  %v3361_v4 = vpack.c.bf16 %v730_v1, %v726_v0  ;;  %v725_v6 = vld [vmem:[#allocation4 + $0x50] sm:$0xff]  ;;  %v475_v0 = vlaneseq  ;;  %p2915_p5 = scmp.lt.s32.totalorder %s2907_s22, %s2907_s22 }
  0x69   : > { %2312 = vmatpush1.bf16.msra.mxu1 %v3289_v16  ;;  %v752_v28 = vld [vmem:[#allocation4 + $0x128] sm:$0xff]  ;;  %v497_v29 = vcombine.high %v471_v26, %v471_v26  ;;  %v467_v30 = vld [vmem:[%s3268_s19] sm:$0xff]  ;;  %v729_v7 = vld [vmem:[#allocation4 + $0x70] sm:$0xff]  ;;  %p2909_p10 = pnand %p2908_p4, %p3964_p8 }
  0x6a   : > { %2314 = vmatprep.subr.bf16.mxu1 %v3292_v17  ;;  %v3309_v32 = vpack.c.bf16 %v752_v28, %v748_v27  ;;  %v747_v33 = vld [vmem:[#allocation4 + $0x100] sm:$0xff]  ;;  %v756_v35 = vld [vmem:[#allocation4 + $0x148] sm:$0xff]  ;;  %v734_v8 = vld [vmem:[#allocation4 + $0x98] sm:$0xff]  ;;  %v3368_v13 = vpack.c.bf16 %v729_v7, %v725_v6  ;;  %v476_v1 = vshrl.u32 %v475_v0, 7  ;;  %p2916_p6 = por %p2915_p5, %p2914_p3 }
  0x6b   : > { %2212 = vmatprep.subr.msk.mxu0 %vm512_vm0, %v497_v29  ;;  %v751_v34 = vld [vmem:[#allocation4 + $0x120] sm:$0xff]  ;;  %v760_v36 = vld [vmem:[#allocation4 + $0x168] sm:$0xff]  ;;  %v738_v12 = vld [vmem:[#allocation4 + $0xb8] sm:$0xff]  ;;  %p2910_p11 = pneg %p2909_p10 }
  0x6c   : > { %2213 = vmatpush1.msk.msra.mxu0 %vm512_vm0, %v471_v26  ;;  %v3315_v37 = vpack.c.bf16 %v751_v34, %v747_v33  ;;  %v472_v38 = vld [vmem:[%s3928_s3 + $0x8] sm:$0xff]  ;;  %v3321_v39 = vpack.c.bf16 %v760_v36, %v756_v35  ;;  %v755_v40 = vld [vmem:[#allocation4 + $0x140] sm:$0xff]  ;;  %v3372_v14 = vpack.c.bf16 %v738_v12, %v734_v8  ;;  %v733_v15 = vld [vmem:[#allocation4 + $0x90] sm:$0xff]  ;;  %v481_v7 = vsub.s32 1, %v476_v1 }
  0x6d   : > { %2316 = vmatpush1.bf16.msra.mxu1 %v3295_v22  ;;  %2214 = vmatmul.mubr.msk.f32.vlgmr.msra.gmra.mrb[0].mxu0 %vm499_vm1, %v467_v30  ;;  %v759_v41 = vld [vmem:[#allocation4 + $0x160] sm:$0xff]  ;;  %v498_v42 = vcombine.high %v472_v38, %v472_v38  ;;  %v764_v43 = vld [vmem:[#allocation4 + $0x188] sm:$0xff]  ;;  %v737_v18 = vld [vmem:[#allocation4 + $0xb0] sm:$0xff]  ;;  %p2917_p7 = pnand %p2916_p6, %p2910_p11 }
  0x6e   : > { %2318 = vmatprep.subr.bf16.mxu1 %v3298_v23  ;;  %591 = vmatprep.mubr.f32.mxu0 %v3057_v9  ;;  %v768_v44 = vld [vmem:[#allocation4 + $0x1a8] sm:$0xff]  ;;  %v3327_v46 = vpack.c.bf16 %v759_v41, %v755_v40  ;;  %v763_v49 = vld [vmem:[#allocation4 + $0x180] sm:$0xff]  ;;  %v742_v19 = vld [vmem:[#allocation4 + $0xd8] sm:$0xff]  ;;  %v3379_v21 = vpack.c.bf16 %v737_v18, %v733_v15  ;;  %v485_v15 = vsub.s32 2, %v476_v1 }
  0x6f   : > { %v468_v45 = vld [vmem:[%s3268_s19 + $0x8] sm:$0xff]  ;;  %2218 = vmatprep.subr.msk.mxu0 %vm512_vm0, %v498_v42  ;;  %v3332_v48 = vpack.c.bf16 %v768_v44, %v764_v43  ;;  %v767_v50 = vld [vmem:[#allocation4 + $0x1a0] sm:$0xff]  ;;  %v746_v20 = vld [vmem:[#allocation4 + $0xf8] sm:$0xff]  ;;  %s3059_s19 = smov 124  }
  0x70   : > { %2219 = vmatpush1.msk.msra.mxu0 %vm512_vm0, %v472_v38  ;;  %v772_v51 = vld [vmem:[#allocation4 + $0x1c8] sm:$0xff]  ;;  %v3338_v53 = vpack.c.bf16 %v767_v50, %v763_v49  ;;  %v771_v56 = vld [vmem:[#allocation4 + $0x1c0] sm:$0xff]  ;;  %v3383_v24 = vpack.c.bf16 %v746_v20, %v742_v19  ;;  %v741_v25 = vld [vmem:[#allocation4 + $0xd0] sm:$0xff]  ;;  %v489_v19 = vsub.s32 3, %v476_v1 }
  0x71   : > { %2320 = vmatpush1.bf16.msra.mxu1 %v3305_v31  ;;  %2215 = vmatmul.mubr.msk.f32.gmra.mrb[2].mxu0 %vm499_vm1, %v468_v45  ;;  %v776_v52 = vld [vmem:[#allocation4 + $0x1e8] sm:$0xff]  ;;  %v775_v57 = vld [vmem:[#allocation4 + $0x1e0] sm:$0xff]  ;;  %v745_v26 = vld [vmem:[#allocation4 + $0xf0] sm:$0xff] }
  0x72   : > { %2322 = vmatprep.subr.bf16.mxu1 %v3309_v32  ;;  %597 = vmatprep.mubr.f32.mxu0 %v3057_v9  ;;  %v3343_v55 = vpack.c.bf16 %v776_v52, %v772_v51  ;;  %v3347_v60 = vpack.c.bf16 %v775_v57, %v771_v56  ;;  %v3355_v2 = vld [vmem:[#allocation10] sm:$0xff]  ;;  %v750_v27 = vld [vmem:[#allocation4 + $0x118] sm:$0xff]  ;;  %v3389_v29 = vpack.c.bf16 %v745_v26, %v741_v25  ;;  %v749_v33 = vld [vmem:[#allocation4 + $0x110] sm:$0xff] }
  0x73   : > { %2370 = vmatprep.subr.bf16.mxu0 %v3279_v5  ;;  %v754_v28 = vld [vmem:[#allocation4 + $0x138] sm:$0xff]  ;;  %v753_v34 = vld [vmem:[#allocation4 + $0x130] sm:$0xff]  ;;  %v473_v6 = vld [vmem:[%s3930_s5] sm:$0xf] }
  0x74   : > { %v758_v35 = vld [vmem:[#allocation4 + $0x158] sm:$0xff]  ;;  %v3398_v38 = vpack.c.bf16 %v753_v34, %v749_v33  ;;  %v757_v41 = vld [vmem:[#allocation4 + $0x150] sm:$0xff]  ;;  %v3452_v12 = vrot.slane %v473_v6, %v481_v7  ;;  %v490_v33 = vrot.slane %v473_v6, %v489_v19 }
  0x75   : > { %2324 = vmatpush1.bf16.msra.mxu1 %v3315_v37  ;;  %2216 = vmatmul.mubr.msk.f32.gmra.mrb[4].mxu0 %vm499_vm1, %v469_v47  ;;  %v762_v36 = vld [vmem:[#allocation4 + $0x178] sm:$0xff]  ;;  %v761_v42 = vld [vmem:[#allocation4 + $0x170] sm:$0xff] }
  0x76   : > { %2326 = vmatprep.subr.bf16.mxu1 %v3321_v39  ;;  %603 = vmatprep.mubr.f32.mxu0 %v3057_v9  ;;  %v3401_v40 = vpack.c.bf16 %v762_v36, %v758_v35  ;;  %v766_v43 = vld [vmem:[#allocation4 + $0x198] sm:$0xff]  ;;  %v765_v49 = vld [vmem:[#allocation4 + $0x190] sm:$0xff] }
  0x77   : > { %v770_v44 = vld [vmem:[#allocation4 + $0x1b8] sm:$0xff]  ;;  %v769_v50 = vld [vmem:[#allocation4 + $0x1b0] sm:$0xff] }
  0x78   : > { %v774_v51 = vld [vmem:[#allocation4 + $0x1d8] sm:$0xff]  ;;  %v773_v57 = vld [vmem:[#allocation4 + $0x1d0] sm:$0xff] }
  0x79   : > { %2328 = vmatpush1.bf16.msra.mxu1 %v3327_v46  ;;  %2217 = vmatmul.mubr.msk.f32.gmra.mrb[6].mxu0 %vm499_vm1, %v470_v54  ;;  %v778_v52 = vld [vmem:[#allocation4 + $0x1f8] sm:$0xff]  ;;  %v777_v58 = vld [vmem:[#allocation4 + $0x1f0] sm:$0xff] }
  0x7a   : > { %2330 = vmatprep.subr.bf16.mxu1 %v3332_v48  ;;  %674 = vmatprep.mubr.f32.mxu0 %v3057_v9  ;;  %v3417_v56 = vpack.c.bf16 %v778_v52, %v774_v51  ;;  %v3422_v59 = vpack.c.bf16 %v777_v58, %v773_v57 }
  0x7d   : > { %2332 = vmatpush1.bf16.msra.mxu1 %v3338_v53  ;;  %2220 = vmatmul.mubr.msk.f32.vlgmr.msra.gmra.mrb[8].mxu0 %vm499_vm1, %v467_v30  ;;  %v3393_v30 = vpack.c.bf16 %v754_v28, %v750_v27  ;;  %v486_v27 = vrot.slane %v473_v6, %v485_v15 }
  0x7e   : > { %2334 = vmatprep.subr.bf16.mxu1 %v3343_v55  ;;  %2372 = vmatpush1.bf16.msra.mxu0 %v3283_v10 }
  0x7f   : > { %2374 = vmatprep.subr.bf16.mxu0 %v3285_v11  ;;  %680 = vmatprep.mubr.f32.mxu0 %v3057_v9 }
  0x81   : > { %2336 = vmatpush1.bf16.msra.mxu1 %v3347_v60  ;;  %2221 = vmatmul.mubr.msk.f32.gmra.mrb[10].mxu0 %vm499_vm1, %v468_v45  ;;  %v3406_v45 = vpack.c.bf16 %v761_v42, %v757_v41 }
  0x82   : > { %2338 = vmatprep.subr.bf16.mxu1 %v3351_v61  ;;  %2376 = vmatpush1.bf16.msra.mxu0 %v3289_v16 }
  0x83   : > { %2378 = vmatprep.subr.bf16.mxu0 %v3292_v17  ;;  %686 = vmatprep.mubr.f32.mxu0 %v3057_v9 }
  0x84   : > { %853 = vmatmul.mubr.f32.vlgmr.msra.gmra.mrb[0].mxu1 %v3355_v2 }
  0x85   : > { %2340 = vmatpush1.bf16.msra.mxu1 %v3357_v3  ;;  %923 = vmatprep.mubr.f32.mxu1 %v3057_v9 }
  0x86   : > { %2342 = vmatprep.subr.bf16.mxu1 %v3361_v4  ;;  %2222 = vmatmul.mubr.msk.f32.gmra.mrb[12].mxu0 %vm499_vm1, %v469_v47  ;;  %v3409_v47 = vpack.c.bf16 %v770_v44, %v766_v43 }
  0x87   : > { %692 = vmatprep.mubr.f32.mxu0 %v3057_v9  ;;  %2380 = vmatpush1.bf16.msra.mxu0 %v3295_v22 }
  0x88   : > { %2382 = vmatprep.subr.bf16.mxu0 %v3298_v23 }
  0x89   : > { %2344 = vmatpush1.bf16.msra.mxu1 %v3368_v13 }
  0x8a   : > { %2346 = vmatprep.subr.bf16.mxu1 %v3372_v14  ;;  %2223 = vmatmul.mubr.msk.f32.gmra.mrb[14].mxu0 %vm499_vm1, %v470_v54  ;;  %v3414_v54 = vpack.c.bf16 %v769_v50, %v765_v49 }
  0x8b   : > { %1030 = vmatprep.mubr.f32.mxu0 %v3057_v9  ;;  %2384 = vmatpush1.bf16.msra.mxu0 %v3305_v31 }
  0x8c   : > { %2386 = vmatprep.subr.bf16.mxu0 %v3309_v32 }
  0x8d   : > { %2348 = vmatpush1.bf16.msra.mxu1 %v3379_v21 }
  0x8e   : > { %2350 = vmatprep.subr.bf16.mxu1 %v3383_v24 }
  0x8f   : > { %2388 = vmatpush1.bf16.msra.mxu0 %v3315_v37 }
  0x90   : > { %2390 = vmatprep.subr.bf16.mxu0 %v3321_v39 }
  0x91   : > { %2352 = vmatpush1.bf16.msra.mxu1 %v3389_v29 }
  0x92   : > { %2354 = vmatprep.subr.bf16.mxu1 %v3393_v30 }
  0x93   : > { %2392 = vmatpush1.bf16.msra.mxu0 %v3327_v46 }
  0x94   : > { %2394 = vmatprep.subr.bf16.mxu0 %v3332_v48 }
  0x95   : > { %2356 = vmatpush1.bf16.msra.mxu1 %v3398_v38 }
  0x96   : > { %2358 = vmatprep.subr.bf16.mxu1 %v3401_v40 }
  0x97   : > { %2396 = vmatpush1.bf16.msra.mxu0 %v3338_v53 }
  0x98   : > { %2398 = vmatprep.subr.bf16.mxu0 %v3343_v55 }
  0x99   : > { %2360 = vmatpush1.bf16.msra.mxu1 %v3406_v45 }
  0x9a   : > { %2362 = vmatprep.subr.bf16.mxu1 %v3409_v47 }
  0x9b   : > { %2400 = vmatpush1.bf16.msra.mxu0 %v3347_v60 }
  0x9c   : > { %2434 = vmatprep.subr.bf16.mxu0 %v3279_v5 }
  0x9d   : > { %2364 = vmatpush1.bf16.msra.mxu1 %v3414_v54 }
  0x9e   : > { %2366 = vmatprep.subr.bf16.mxu1 %v3417_v56 }
  0xa1   : > { %2368 = vmatpush1.bf16.msra.mxu1 %v3422_v59 }
  0xa2   : > { %2402 = vmatprep.subr.bf16.mxu1 %v3351_v61 }
  0xa4   : > { %924 = vmatmul.mubr.f32.vlgmr.msra.gmra.mrb[2].mxu1 %v3355_v2  ;;  %v477_v2 = vsub.s32 0, %v476_v1 }
  0xa5   : > { %2404 = vmatpush1.bf16.msra.mxu1 %v3357_v3  ;;  %1101 = vmatprep.mubr.f32.mxu1 %v3057_v9 }
  0xa6   : > { %2406 = vmatprep.subr.bf16.mxu1 %v3361_v4  ;;  %v3450_v8 = vrot.slane %v473_v6, %v477_v2 }
  0xa9   : > { %2408 = vmatpush1.bf16.msra.mxu1 %v3368_v13 }
  0xaa   : > { %2410 = vmatprep.subr.bf16.mxu1 %v3372_v14 }
  0xad   : > { %2412 = vmatpush1.bf16.msra.mxu1 %v3379_v21 }
  0xae   : > { %2414 = vmatprep.subr.bf16.mxu1 %v3383_v24 }
  0xb1   : > { %2416 = vmatpush1.bf16.msra.mxu1 %v3389_v29 }
  0xb2   : > { %2418 = vmatprep.subr.bf16.mxu1 %v3393_v30 }
  0xb5   : > { %2420 = vmatpush1.bf16.msra.mxu1 %v3398_v38 }
  0xb6   : > { %2422 = vmatprep.subr.bf16.mxu1 %v3401_v40 }
  0xb9   : > { %2424 = vmatpush1.bf16.msra.mxu1 %v3406_v45 }
  0xba   : > { %2426 = vmatprep.subr.bf16.mxu1 %v3409_v47 }
  0xbd   : > { %2428 = vmatpush1.bf16.msra.mxu1 %v3414_v54 }
  0xbe   : > { %2430 = vmatprep.subr.bf16.mxu1 %v3417_v56 }
  0xc1   : > { %2432 = vmatpush1.bf16.msra.mxu1 %v3422_v59 }
  0xc2   : > { %2466 = vmatprep.subr.bf16.mxu1 %v3351_v61 }
 0x140   : > { %v587_v62 = vpop.f32.mrb[0].mxu0 }
 0x141   : > { %v589_v63 = vpop.f32.mrb[1].mxu0  ;;  %v588_v20 = vadd.f32 %v587_v62, %v3450_v8 }
 0x142   : > { %v590_v26 = vadd.f32 %v589_v63, %v3452_v12 }
 0x150   : > { %v676_v18 = vpop.f32.mrb[8].mxu0 }
 0x151   : > { %v678_v25 = vpop.f32.mrb[9].mxu0  ;;  %v677_v7 = vadd.f32 %v676_v18, %v486_v27 }
 0x152   : > { %v679_v19 = vadd.f32 %v678_v25, %v490_v33 }
 0x154   : > { %v682_v34 = vpop.f32.mrb[10].mxu0 }
 0x155   : > { %v3456_v41 = vadd.f32 %v682_v34, %v486_v27  ;;  %v684_v42 = vpop.f32.mrb[11].mxu0 }
 0x156   : > { %v3458_v44 = vadd.f32 %v684_v42, %v490_v33 }
 0x157   : > { %v854_v28 = vpop.f32.mrb[0].mxu1 }
 0x158   : > { %v930_v35 = vadd.f32 %v854_v28, %v588_v20  ;;  %v856_v36 = vpop.f32.mrb[1].mxu1 }
 0x159   : > { %v931_v43 = vadd.f32 %v856_v36, %v590_v26  ;;  %v688_v49 = vpop.f32.mrb[12].mxu0 }
 0x15a   : > { %v3460_v50 = vadd.f32 %v688_v49, %v486_v27  ;;  %v690_v51 = vpop.f32.mrb[13].mxu0  ;;  %v2224_v1 = vmul.f32 -1.442695, %v930_v35 }
 0x15b   : > { %v3462_v52 = vadd.f32 %v690_v51, %v490_v33  ;;  %v2225_v0 = vmul.f32 -1.442695, %v931_v43  ;;  %v780_v43 = vld [vmem:[#allocation12] sm:$0xff] }
 0x15d   : > { %v694_v57 = vpop.f32.mrb[14].mxu0  ;;  %2731 = vpow2.f32 %v2225_v0 }
 0x15e   : > { %v3464_v58 = vadd.f32 %v694_v57, %v486_v27  ;;  %v696_v62 = vpop.f32.mrb[15].mxu0  ;;  %2733 = vpow2.f32 %v2224_v1 }
 0x15f   : > { %v3466_v63 = vadd.f32 %v696_v62, %v490_v33 }
 0x167   : > { %v2732_v2 = vpop.eup %2731 }
 0x168   : > { %v2734_v6 = vpop.eup %2733  ;;  %v944_v15 = vadd.f32 1.0, %v2732_v2 }
 0x169   : > { %v943_v20 = vadd.f32 1.0, %v2734_v6 }
 0x16a   : > { %2735 = vrcp.f32 %v944_v15 }
 0x16b   : > { %2737 = vrcp.f32 %v943_v20 }
 0x174   : > { %v2736_v49 = vpop.eup %2735 }
 0x175   : > { %v2738_v35 = vpop.eup %2737  ;;  %v953_v62 = vmul.f32 %v2736_v49, %v780_v43 }
 0x177   : > { %v925_v26 = vpop.f32.mrb[2].mxu1 }
 0x178   : > { %v932_v28 = vadd.f32 %v925_v26, %v677_v7  ;;  %v927_v34 = vpop.f32.mrb[3].mxu1 }
 0x179   : > { %v933_v36 = vadd.f32 %v927_v34, %v679_v19 }
 0x17a   : > { %v2226_v42 = vmul.f32 -1.442695, %v932_v28 }
 0x17b   : > { %2739 = vtanh.f32 %v933_v36 }
 0x17c   : > { %2741 = vpow2.f32 %v2226_v42 }
 0x185   : > { %v2740_v51 = vpop.eup %2739 }
 0x186   : > { %v2742_v57 = vpop.eup %2741  ;;  %v954_v0 = vmul.f32 %v2740_v51, %v2738_v35 }
 0x187   : > { %v945_v18 = vadd.f32 1.0, %v2742_v57 }
 0x188   : > { %v3468_v27 = vadd.f32 %v954_v0, %v953_v62 }
 0x189   : > { %2743 = vrcp.f32 %v945_v18 }
 0x18a   : > { %2745 = vtanh.f32 %v3468_v27 }
 0x193   : > { %v2744_v25 = vpop.eup %2743 }
 0x194   : > { %v2746_v33 = vpop.eup %2745 }
 0x195   : > { %v3471_v1 = vmul.f32 %v2746_v33, %v2744_v25 }
 0x197   : > { %1031 = vmatmul.mubr.f32.vlgmr.msra.gmra.mrb[2].mxu0 %v3471_v1  ;;  %1102 = vmatmul.mubr.f32.vlgmr.msra.gmra.mrb[4].mxu1 %v3471_v1 }
 0x198   : > { %2436 = vmatpush1.bf16.msra.mxu0 %v3283_v10  ;;  %2468 = vmatpush1.bf16.msra.mxu1 %v3357_v3 }
 0x199   : > { %2438 = vmatprep.subr.bf16.mxu0 %v3285_v11  ;;  %2470 = vmatprep.subr.bf16.mxu1 %v3361_v4 }
 0x19a   : > { %1209 = vmatprep.mubr.f32.mxu0 %v3057_v9  ;;  %1280 = vmatprep.mubr.f32.mxu1 %v3057_v9 }
 0x19c   : > { %2440 = vmatpush1.bf16.msra.mxu0 %v3289_v16  ;;  %2472 = vmatpush1.bf16.msra.mxu1 %v3368_v13 }
 0x19d   : > { %2442 = vmatprep.subr.bf16.mxu0 %v3292_v17  ;;  %2474 = vmatprep.subr.bf16.mxu1 %v3372_v14 }
 0x1a0   : > { %2444 = vmatpush1.bf16.msra.mxu0 %v3295_v22  ;;  %2476 = vmatpush1.bf16.msra.mxu1 %v3379_v21 }
 0x1a1   : > { %2446 = vmatprep.subr.bf16.mxu0 %v3298_v23  ;;  %2478 = vmatprep.subr.bf16.mxu1 %v3383_v24 }
 0x1a4   : > { %2448 = vmatpush1.bf16.msra.mxu0 %v3305_v31  ;;  %2480 = vmatpush1.bf16.msra.mxu1 %v3389_v29 }
 0x1a5   : > { %2450 = vmatprep.subr.bf16.mxu0 %v3309_v32  ;;  %2482 = vmatprep.subr.bf16.mxu1 %v3393_v30 }
 0x1a8   : > { %2452 = vmatpush1.bf16.msra.mxu0 %v3315_v37  ;;  %2484 = vmatpush1.bf16.msra.mxu1 %v3398_v38 }
 0x1a9   : > { %2454 = vmatprep.subr.bf16.mxu0 %v3321_v39  ;;  %2486 = vmatprep.subr.bf16.mxu1 %v3401_v40 }
 0x1ac   : > { %2456 = vmatpush1.bf16.msra.mxu0 %v3327_v46  ;;  %2488 = vmatpush1.bf16.msra.mxu1 %v3406_v45 }
 0x1ad   : > { %2458 = vmatprep.subr.bf16.mxu0 %v3332_v48  ;;  %2490 = vmatprep.subr.bf16.mxu1 %v3409_v47 }
 0x1b0   : > { %2460 = vmatpush1.bf16.msra.mxu0 %v3338_v53  ;;  %2492 = vmatpush1.bf16.msra.mxu1 %v3414_v54 }
 0x1b1   : > { %2462 = vmatprep.subr.bf16.mxu0 %v3343_v55  ;;  %2494 = vmatprep.subr.bf16.mxu1 %v3417_v56 }
 0x1b4   : > { %2464 = vmatpush1.bf16.msra.mxu0 %v3347_v60  ;;  %2496 = vmatpush1.bf16.msra.mxu1 %v3422_v59 }
 0x1b5   : > { %2498 = vmatprep.subr.bf16.mxu0 %v3279_v5  ;;  %2530 = vmatprep.subr.bf16.mxu1 %v3351_v61 }
 0x26a   : > { %v1032_v2 = vpop.f32.mrb[2].mxu0  ;;  %v1103_v6 = vpop.f32.mrb[4].mxu1 }
 0x26b   : > { %v2597_v7 = vadd.f32 %v1032_v2, %v3450_v8  ;;  %v1110_v15 = vadd.f32 %v1103_v6, %v3456_v41  ;;  %v1034_v19 = vpop.f32.mrb[3].mxu0  ;;  %v1105_v20 = vpop.f32.mrb[5].mxu1 }
 0x26c   : > { %v2598_v26 = vadd.f32 %v1034_v19, %v3452_v12  ;;  %v1111_v28 = vadd.f32 %v1105_v20, %v3458_v44  ;;  %v1510_v20 = vld [vmem:[#allocation7 + $0x40] sm:$0xff] }
 0x26d   : > { %v2227_v34 = vmul.f32 -1.442695, %v2597_v7  ;;  %v2229_v42 = vmul.f32 -1.442695, %v1110_v15  ;;  %v1508_v7 = vld [vmem:[#allocation7 + $0x30] sm:$0xff]  ;;  %v1509_v15 = vld [vmem:[#allocation7 + $0x38] sm:$0xff] }
 0x26e   : > { %v2228_v36 = vmul.f32 -1.442695, %v2598_v26  ;;  %v2573_v19 = vpack.c.bf16 %v1509_v15, %v1508_v7  ;;  %v1511_v26 = vld [vmem:[#allocation7 + $0x48] sm:$0xff] }
 0x26f   : > { %2747 = vpow2.f32 %v2227_v34  ;;  %v1512_v34 = vld [vmem:[#allocation7 + $0x50] sm:$0xff] }
 0x270   : > { %2749 = vpow2.f32 %v2228_v36  ;;  %v1513_v36 = vld [vmem:[#allocation7 + $0x58] sm:$0xff] }
 0x271   : > { %2751 = vtanh.f32 %v1111_v28  ;;  %v2577_v28 = vpack.c.bf16 %v1511_v26, %v1510_v20 }
 0x272   : > { %2753 = vpow2.f32 %v2229_v42  ;;  %v2581_v42 = vpack.c.bf16 %v1513_v36, %v1512_v34 }
 0x279   : > { %v2748_v5 = vpop.eup %2747 }
 0x27a   : > { %v1121_v49 = vadd.f32 1.0, %v2748_v5  ;;  %v2750_v61 = vpop.eup %2749  ;;  %v1514_v5 = vld [vmem:[#allocation7 + $0x60] sm:$0xff] }
 0x27b   : > { %v1122_v43 = vadd.f32 1.0, %v2750_v61  ;;  %v2752_v41 = vpop.eup %2751  ;;  %v1516_v61 = vld [vmem:[#allocation7 + $0x70] sm:$0xff] }
 0x27c   : > { %2755 = vrcp.f32 %v1121_v49  ;;  %v2754_v35 = vpop.eup %2753  ;;  %v1515_v49 = vld [vmem:[#allocation7 + $0x68] sm:$0xff] }
 0x27d   : > { %2757 = vrcp.f32 %v1122_v43  ;;  %v1123_v0 = vadd.f32 1.0, %v2754_v35  ;;  %v1517_v43 = vld [vmem:[#allocation7 + $0x78] sm:$0xff] }
 0x27f   : > { %2759 = vrcp.f32 %v1123_v0 }
 0x286   : > { %v2756_v51 = vpop.eup %2755 }
 0x287   : > { %v1132_v57 = vmul.f32 %v2756_v51, %v2752_v41  ;;  %v2758_v62 = vpop.eup %2757  ;;  %v2589_v41 = vpack.c.bf16 %v1517_v43, %v1516_v61 }
 0x288   : > { %v1131_v44 = vmul.f32 %v2758_v62, %v3468_v27  ;;  %v1507_v27 = vld [vmem:[#allocation7 + $0x28] sm:$0xff] }
 0x289   : > { %v2760_v25 = vpop.eup %2759 }
 0x28a   : > { %v3514_v18 = vadd.f32 %v1132_v57, %v1131_v44 }
 0x28c   : > { %2761 = vtanh.f32 %v3514_v18 }
 0x296   : > { %v2762_v33 = vpop.eup %2761 }
 0x297   : > { %v3517_v2 = vmul.f32 %v2762_v33, %v2760_v25 }
 0x299   : > { %1210 = vmatmul.mubr.f32.vlgmr.msra.gmra.mrb[4].mxu0 %v3517_v2  ;;  %1281 = vmatmul.mubr.f32.vlgmr.msra.gmra.mrb[6].mxu1 %v3517_v2 }
 0x29a   : > { %2500 = vmatpush1.bf16.msra.mxu0 %v3283_v10  ;;  %2532 = vmatpush1.bf16.msra.mxu1 %v3357_v3  ;;  %v1503_v10 = vld [vmem:[#allocation7 + $0x8] sm:$0xff] }
 0x29b   : > { %2502 = vmatprep.subr.bf16.mxu0 %v3285_v11  ;;  %2534 = vmatprep.subr.bf16.mxu1 %v3361_v4 }
 0x29c   : > { %1388 = vmatprep.mubr.f32.mxu0 %v3057_v9  ;;  %1459 = vmatprep.mubr.f32.mxu1 %v3057_v9  ;;  %v1502_v9 = vld [vmem:[#allocation7] sm:$0xff] }
 0x29d   : > { %v2561_v11 = vpack.c.bf16 %v1503_v10, %v1502_v9 }
 0x29e   : > { %2504 = vmatpush1.bf16.msra.mxu0 %v3289_v16  ;;  %2536 = vmatpush1.bf16.msra.mxu1 %v3368_v13 }
 0x29f   : > { %2506 = vmatprep.subr.bf16.mxu0 %v3292_v17  ;;  %2538 = vmatprep.subr.bf16.mxu1 %v3372_v14 }
 0x2a2   : > { %2508 = vmatpush1.bf16.msra.mxu0 %v3295_v22  ;;  %2540 = vmatpush1.bf16.msra.mxu1 %v3379_v21 }
 0x2a3   : > { %2510 = vmatprep.subr.bf16.mxu0 %v3298_v23  ;;  %2542 = vmatprep.subr.bf16.mxu1 %v3383_v24 }
 0x2a6   : > { %2512 = vmatpush1.bf16.msra.mxu0 %v3305_v31  ;;  %2544 = vmatpush1.bf16.msra.mxu1 %v3389_v29 }
 0x2a7   : > { %2514 = vmatprep.subr.bf16.mxu0 %v3309_v32  ;;  %2546 = vmatprep.subr.bf16.mxu1 %v3393_v30 }
 0x2aa   : > { %2516 = vmatpush1.bf16.msra.mxu0 %v3315_v37  ;;  %2548 = vmatpush1.bf16.msra.mxu1 %v3398_v38 }
 0x2ab   : > { %2518 = vmatprep.subr.bf16.mxu0 %v3321_v39  ;;  %2550 = vmatprep.subr.bf16.mxu1 %v3401_v40 }
 0x2ae   : > { %2520 = vmatpush1.bf16.msra.mxu0 %v3327_v46  ;;  %2552 = vmatpush1.bf16.msra.mxu1 %v3406_v45  ;;  %v1504_v45 = vld [vmem:[#allocation7 + $0x10] sm:$0xff] }
 0x2af   : > { %2522 = vmatprep.subr.bf16.mxu0 %v3332_v48  ;;  %2554 = vmatprep.subr.bf16.mxu1 %v3409_v47  ;;  %v1505_v47 = vld [vmem:[#allocation7 + $0x18] sm:$0xff] }
 0x2b2   : > { %2524 = vmatpush1.bf16.msra.mxu0 %v3338_v53  ;;  %2556 = vmatpush1.bf16.msra.mxu1 %v3414_v54 }
 0x2b3   : > { %2526 = vmatprep.subr.bf16.mxu0 %v3343_v55  ;;  %2558 = vmatprep.subr.bf16.mxu1 %v3417_v56 }
 0x2b6   : > { %2528 = vmatpush1.bf16.msra.mxu0 %v3347_v60  ;;  %2560 = vmatpush1.bf16.msra.mxu1 %v3422_v59 }
 0x2b7   : > { %2562 = vmatprep.subr.bf16.mxu0 %v2561_v11 }
 0x36c   : > { %v1211_v16 = vpop.f32.mrb[4].mxu0  ;;  %v1282_v17 = vpop.f32.mrb[6].mxu1 }
 0x36d   : > { %v2599_v22 = vadd.f32 %v1211_v16, %v3450_v8  ;;  %v1289_v23 = vadd.f32 %v1282_v17, %v3460_v50  ;;  %v1213_v31 = vpop.f32.mrb[5].mxu0  ;;  %v1284_v32 = vpop.f32.mrb[7].mxu1  ;;  %v2565_v50 = vpack.c.bf16 %v1505_v47, %v1504_v45 }
 0x36e   : > { %v2600_v37 = vadd.f32 %v1213_v31, %v3452_v12  ;;  %v1290_v39 = vadd.f32 %v1284_v32, %v3462_v52  ;;  %v1506_v52 = vld [vmem:[#allocation7 + $0x20] sm:$0xff] }
 0x36f   : > { %v2230_v46 = vmul.f32 -1.442695, %v2599_v22  ;;  %v2232_v53 = vmul.f32 -1.442695, %v1289_v23  ;;  %v2569_v6 = vpack.c.bf16 %v1507_v27, %v1506_v52 }
 0x370   : > { %v2231_v48 = vmul.f32 -1.442695, %v2600_v37 }
 0x371   : > { %2763 = vpow2.f32 %v2230_v46 }
 0x372   : > { %2765 = vpow2.f32 %v2231_v48 }
 0x373   : > { %2767 = vtanh.f32 %v1290_v39 }
 0x374   : > { %2769 = vpow2.f32 %v2232_v53 }
 0x37b   : > { %v2764_v55 = vpop.eup %2763 }
 0x37c   : > { %v1300_v60 = vadd.f32 1.0, %v2764_v55  ;;  %v2766_v3 = vpop.eup %2765 }
 0x37d   : > { %v1301_v4 = vadd.f32 1.0, %v2766_v3  ;;  %v2768_v13 = vpop.eup %2767 }
 0x37e   : > { %2771 = vrcp.f32 %v1300_v60  ;;  %v2770_v14 = vpop.eup %2769 }
 0x37f   : > { %2773 = vrcp.f32 %v1301_v4  ;;  %v1302_v30 = vadd.f32 1.0, %v2770_v14 }
 0x381   : > { %2775 = vrcp.f32 %v1302_v30 }
 0x388   : > { %v2772_v21 = vpop.eup %2771 }
 0x389   : > { %v1311_v24 = vmul.f32 %v2772_v21, %v2768_v13  ;;  %v2774_v29 = vpop.eup %2773 }
 0x38a   : > { %v1310_v38 = vmul.f32 %v2774_v29, %v3514_v18 }
 0x38b   : > { %v2776_v54 = vpop.eup %2775 }
 0x38c   : > { %v3558_v40 = vadd.f32 %v1311_v24, %v1310_v38 }
 0x38e   : > { %2777 = vtanh.f32 %v3558_v40 }
 0x398   : > { %v2778_v56 = vpop.eup %2777 }
 0x399   : > { %v1314_v59 = vmul.f32 %v2778_v56, %v2776_v54 }
 0x39b   : > { %1389 = vmatmul.mubr.f32.vlgmr.msra.gmra.mrb[6].mxu0 %v1314_v59  ;;  %1460 = vmatmul.mubr.f32.vlgmr.msra.gmra.mrb[8].mxu1 %v1314_v59 }
 0x39c   : > { %2564 = vmatpush3.bf16.msra.mxu0 %v2561_v11  ;;  %2299 = vmatprep.mubr.f32.mxu0 %v3471_v1  ;;  %v2585_v1 = vpack.c.bf16 %v1515_v49, %v1514_v5 }
 0x39d   : > { %2566 = vmatprep.subr.bf16.mxu0 %v2565_v50 }
 0x3a0   : > { %2568 = vmatpush3.bf16.msra.mxu0 %v2565_v50 }
 0x3a1   : > { %2570 = vmatprep.subr.bf16.mxu0 %v2569_v6 }
 0x3a4   : > { %2572 = vmatpush3.bf16.msra.mxu0 %v2569_v6 }
 0x3a5   : > { %2574 = vmatprep.subr.bf16.mxu0 %v2573_v19 }
 0x3a8   : > { %2576 = vmatpush3.bf16.msra.mxu0 %v2573_v19 }
 0x3a9   : > { %2578 = vmatprep.subr.bf16.mxu0 %v2577_v28 }
 0x3ac   : > { %2580 = vmatpush3.bf16.msra.mxu0 %v2577_v28 }
 0x3ad   : > { %2582 = vmatprep.subr.bf16.mxu0 %v2581_v42 }
 0x3b0   : > { %2584 = vmatpush3.bf16.msra.mxu0 %v2581_v42 }
 0x3b1   : > { %2586 = vmatprep.subr.bf16.mxu0 %v2585_v1 }
 0x3b4   : > { %2588 = vmatpush3.bf16.msra.mxu0 %v2585_v1 }
 0x3b5   : > { %2590 = vmatprep.subr.bf16.mxu0 %v2589_v41 }
 0x3b8   : > { %2592 = vmatpush3.bf16.msra.mxu0 %v2589_v41 }
 0x3bb   : > { %2300 = vmatmul.mubr.f32.vlgmr.msra.gmra.mrb[16].mxu0 %v3517_v2 }
 0x3bc   : > { %2302 = vmatprep.mubr.f32.mxu0 %v1314_v59 }
 0x46e   : > { %v1390_v35 = vpop.f32.mrb[6].mxu0  ;;  %v1461_v51 = vpop.f32.mrb[8].mxu1 }
 0x46f   : > { %v2601_v57 = vadd.f32 %v1390_v35, %v3450_v8  ;;  %v1468_v62 = vadd.f32 %v1461_v51, %v3464_v58  ;;  %v1392_v0 = vpop.f32.mrb[7].mxu0  ;;  %v1463_v44 = vpop.f32.mrb[9].mxu1 }
 0x470   : > { %v2602_v18 = vadd.f32 %v1392_v0, %v3452_v12  ;;  %v1469_v25 = vadd.f32 %v1463_v44, %v3466_v63  ;;  %v2236_v63 = vld [vmem:[%s3932_s7] ss:$0 sm:$0xff] }
 0x471   : > { %v2233_v33 = vmul.f32 -1.442695, %v2601_v57  ;;  %v2235_v10 = vmul.f32 -1.442695, %v1468_v62 }
 0x472   : > { %v2234_v9 = vmul.f32 -1.442695, %v2602_v18 }
 0x473   : > { %2779 = vpow2.f32 %v2233_v33 }
 0x474   : > { %2781 = vpow2.f32 %v2234_v9 }
 0x475   : > { %2783 = vtanh.f32 %v1469_v25 }
 0x476   : > { %2785 = vpow2.f32 %v2235_v10 }
 0x47d   : > { %v2780_v11 = vpop.eup %2779 }
 0x47e   : > { %v1479_v2 = vadd.f32 1.0, %v2780_v11  ;;  %v2782_v16 = vpop.eup %2781 }
 0x47f   : > { %v1480_v8 = vadd.f32 1.0, %v2782_v16  ;;  %v2784_v58 = vpop.eup %2783 }
 0x480   : > { %2787 = vrcp.f32 %v1479_v2  ;;  %v2786_v17 = vpop.eup %2785 }
 0x481   : > { %2789 = vrcp.f32 %v1480_v8  ;;  %v1481_v31 = vadd.f32 1.0, %v2786_v17 }
 0x483   : > { %2791 = vrcp.f32 %v1481_v31 }
 0x48a   : > { %v2788_v22 = vpop.eup %2787 }
 0x48b   : > { %v1490_v23 = vmul.f32 %v2788_v22, %v2784_v58  ;;  %v2790_v12 = vpop.eup %2789 }
 0x48c   : > { %v1489_v32 = vmul.f32 %v2790_v12, %v3558_v40 }
 0x48d   : > { %v2792_v55 = vpop.eup %2791 }
 0x48e   : > { %v2301_v37 = vpop.f32.mrb[16].mxu0  ;;  %v1491_v39 = vadd.f32 %v1490_v23, %v1489_v32 }
 0x48f   : > { %v3571_v46 = vadd.f32 %v2301_v37, %v2236_v63  ;;  %v1591_v48 = vpop.f32.mrb[17].mxu0 }
 0x490   : > { %1497 = vst [vmem:[#allocation12] sm:$0xff] %v1491_v39  ;;  %2793 = vtanh.f32 %v1491_v39  ;;  %v3577_v53 = vadd.f32 %v2236_v63, %v1591_v48 }
 0x491   : > { %1640 = vrot.lane.b32.xlu1 %v3571_v46, %s3058_s21  ;;  %1624 = vrot.lane.b32.xlu0 %v3571_v46, %s3059_s19 }
 0x495   : > { %1656 = vrot.lane.b32.xlu1 %v3571_v46, %s3060_s29  ;;  %1622 = vrot.lane.b32.xlu0 %v3577_v53, %s3059_s19 }
 0x499   : > { %1638 = vrot.lane.b32.xlu0 %v3577_v53, %s3058_s21 }
 0x49a   : > { %v2794_v60 = vpop.eup %2793 }
 0x49b   : > { %v1493_v3 = vmul.f32 %v2794_v60, %v2792_v55 }
 0x49d   : > { %1654 = vrot.lane.b32.xlu0 %v3577_v53, %s3060_s29  ;;  %2303 = vmatmul.mubr.f32.gmra.mrb[18].mxu0 %v1493_v3  ;;  %1496 = vst [vmem:[#allocation10] sm:$0xff] %v1493_v3 }
 0x4a1   : > { %1670 = vrot.lane.b32.xlu0 %v3577_v53, %s3061_s30 }
 0x503   : > { %v1625_v4 = vpop.permute.xlu0 %1624  ;;  %v1641_v59 = vpop.permute.xlu1 %1640 }
 0x504   : > { %v1635_v15 = vmax.f32 %v3571_v46, %v1625_v4 }
 0x506   : > { %v1651_v26 = vmax.f32 %v1635_v15, %v1641_v59 }
 0x507   : > { %v1623_v13 = vpop.permute.xlu0 %1622  ;;  %v1657_v50 = vpop.permute.xlu1 %1656 }
 0x508   : > { %v1634_v40 = vmax.f32 %v3577_v53, %v1623_v13  ;;  %v1667_v42 = vmax.f32 %v1651_v26, %v1657_v50 }
 0x50b   : > { %v1639_v14 = vpop.permute.xlu0 %1638 }
 0x50c   : > { %v1650_v45 = vmax.f32 %v1634_v40, %v1639_v14 }
 0x50f   : > { %v1655_v38 = vpop.permute.xlu0 %1654 }
 0x510   : > { %v1666_v54 = vmax.f32 %v1650_v45, %v1655_v38 }
 0x513   : > { %v1671_v47 = vpop.permute.xlu0 %1670 }
 0x514   : > { %v3606_v56 = vmax.f32 %v1666_v54, %v1671_v47 }
 0x516   : > { %v1686_v3 = vsub.f32 %v3577_v53, %v3606_v56 }
 0x518   : > { %v1690_v40 = vmul.f32 1.442695, %v1686_v3 }
 0x570   : > { %v2304_v21 = vpop.f32.mrb[18].mxu0 }
 0x571   : > { %v3589_v24 = vadd.f32 %v2304_v21, %v2236_v63  ;;  %v1601_v29 = vpop.f32.mrb[19].mxu0 }
 0x572   : > { %v3591_v30 = vadd.f32 %v2236_v63, %v1601_v29 }
 0x573   : > { %1628 = vrot.lane.b32.xlu1 %v3589_v24, %s3059_s19 }
 0x574   : > { %1642 = vrot.lane.b32.xlu0 %v3591_v30, %s3058_s21 }
 0x577   : > { %1644 = vrot.lane.b32.xlu1 %v3589_v24, %s3058_s21 }
 0x578   : > { %1658 = vrot.lane.b32.xlu0 %v3591_v30, %s3060_s29 }
 0x57b   : > { %1660 = vrot.lane.b32.xlu1 %v3589_v24, %s3060_s29 }
 0x57c   : > { %1674 = vrot.lane.b32.xlu0 %v3591_v30, %s3061_s30 }
 0x57f   : > { %1626 = vrot.lane.b32.xlu1 %v3591_v30, %s3059_s19 }
 0x580   : > { %1702 = vrot.lane.b32.xlu0 %v3606_v56, %s3062_s20 }
 0x583   : > { %1672 = vrot.lane.b32.xlu1 %v3571_v46, %s3061_s30 }
 0x584   : > { %1726 = vrot.lane.b32.xlu0 %v3606_v56, %s3063_s11 }
 0x587   : > { %1676 = vrot.lane.b32.xlu1 %v3589_v24, %s3061_s30 }
 0x588   : > { %1750 = vrot.lane.b32.xlu0 %v3606_v56, %s3064_s13 }
 0x58c   : > { %1774 = vrot.lane.b32.xlu0 %v3606_v56, %s3065_s18 }
 0x5e5   : > { %v1629_v52 = vpop.permute.xlu1 %1628 }
 0x5e6   : > { %v1643_v27 = vpop.permute.xlu0 %1642  ;;  %v1637_v18 = vmax.f32 %v3589_v24, %v1629_v52 }
 0x5e9   : > { %v1645_v6 = vpop.permute.xlu1 %1644 }
 0x5ea   : > { %v1659_v7 = vpop.permute.xlu0 %1658  ;;  %v1653_v33 = vmax.f32 %v1637_v18, %v1645_v6 }
 0x5ed   : > { %v1661_v19 = vpop.permute.xlu1 %1660 }
 0x5ee   : > { %v1675_v20 = vpop.permute.xlu0 %1674  ;;  %v1669_v2 = vmax.f32 %v1653_v33, %v1661_v19 }
 0x5f1   : > { %v1627_v28 = vpop.permute.xlu1 %1626 }
 0x5f2   : > { %v1636_v34 = vmax.f32 %v3591_v30, %v1627_v28  ;;  %v1703_v36 = vpop.permute.xlu0 %1702 }
 0x5f3   : > { %v1714_v41 = vsub.f32 %v3577_v53, %v1703_v36 }
 0x5f4   : > { %v1652_v5 = vmax.f32 %v1636_v34, %v1643_v27 }
 0x5f5   : > { %v1673_v49 = vpop.permute.xlu1 %1672  ;;  %v1718_v57 = vmul.f32 1.442695, %v1714_v41 }
 0x5f6   : > { %v1668_v1 = vmax.f32 %v1652_v5, %v1659_v7  ;;  %v3624_v61 = vmax.f32 %v1667_v42, %v1673_v49  ;;  %v1727_v43 = vpop.permute.xlu0 %1726 }
 0x5f7   : > { %v1738_v62 = vsub.f32 %v3577_v53, %v1727_v43  ;;  %2795 = vpow2.f32 %v1718_v57 }
 0x5f8   : > { %v3627_v35 = vmax.f32 %v1668_v1, %v1675_v20  ;;  %1704 = vrot.lane.b32.xlu1 %v3624_v61, %s3062_s20 }
 0x5f9   : > { %v1742_v0 = vmul.f32 1.442695, %v1738_v62  ;;  %v1677_v9 = vpop.permute.xlu1 %1676 }
 0x5fa   : > { %v1751_v51 = vpop.permute.xlu0 %1750  ;;  %1706 = vrot.lane.b32.xlu0 %v3627_v35, %s3062_s20  ;;  %v3647_v16 = vmax.f32 %v1669_v2, %v1677_v9  ;;  %v1688_v3 = vsub.f32 %v3591_v30, %v3627_v35 }
 0x5fb   : > { %v1762_v44 = vsub.f32 %v3577_v53, %v1751_v51  ;;  %2797 = vpow2.f32 %v1742_v0 }
 0x5fc   : > { %1728 = vrot.lane.b32.xlu1 %v3624_v61, %s3063_s11 }
 0x5fd   : > { %v1766_v10 = vmul.f32 1.442695, %v1762_v44 }
 0x5fe   : > { %1730 = vrot.lane.b32.xlu0 %v3627_v35, %s3063_s11  ;;  %v1775_v25 = vpop.permute.xlu0 %1774 }
 0x5ff   : > { %v1786_v11 = vsub.f32 %v3577_v53, %v1775_v25  ;;  %2799 = vpow2.f32 %v1766_v10 }
 0x600   : > { %1752 = vrot.lane.b32.xlu1 %v3624_v61, %s3064_s13 }
 0x601   : > { %v1790_v8 = vmul.f32 1.442695, %v1786_v11  ;;  %v3653_v58 = vpop.eup %2795 }
 0x602   : > { %1754 = vrot.lane.b32.xlu0 %v3627_v35, %s3064_s13 }
 0x603   : > { %2801 = vpow2.f32 %v1790_v8 }
 0x604   : > { %1776 = vrot.lane.b32.xlu1 %v3624_v61, %s3065_s18 }
 0x605   : > { %v3659_v17 = vpop.eup %2797 }
 0x606   : > { %1778 = vrot.lane.b32.xlu0 %v3627_v35, %s3065_s18 }
 0x608   : > { %1708 = vrot.lane.b32.xlu1 %v3647_v16, %s3062_s20 }
 0x609   : > { %v3665_v22 = vpop.eup %2799 }
 0x60a   : > { %1802 = vrot.lane.b32.xlu0 %v3653_v58, %s3059_s19 }
 0x60c   : > { %1732 = vrot.lane.b32.xlu1 %v3647_v16, %s3063_s11 }
 0x60d   : > { %v3671_v23 = vpop.eup %2801 }
 0x60e   : > { %1822 = vrot.lane.b32.xlu0 %v3659_v17, %s3058_s21 }
 0x610   : > { %1756 = vrot.lane.b32.xlu1 %v3647_v16, %s3064_s13 }
 0x612   : > { %1842 = vrot.lane.b32.xlu0 %v3665_v22, %s3060_s29 }
 0x614   : > { %1780 = vrot.lane.b32.xlu1 %v3647_v16, %s3065_s18 }
 0x616   : > { %1862 = vrot.lane.b32.xlu0 %v3671_v23, %s3061_s30 }
 0x66a   : > { %v1705_v12 = vpop.permute.xlu1 %1704 }
 0x66b   : > { %v1715_v31 = vsub.f32 %v3571_v46, %v1705_v12 }
 0x66c   : > { %v1707_v63 = vpop.permute.xlu0 %1706 }
 0x66d   : > { %v1720_v32 = vmul.f32 1.442695, %v1715_v31  ;;  %v1716_v37 = vsub.f32 %v3591_v30, %v1707_v63 }
 0x66e   : > { %v1729_v39 = vpop.permute.xlu1 %1728 }
 0x66f   : > { %2803 = vpow2.f32 %v1720_v32  ;;  %v1722_v48 = vmul.f32 1.442695, %v1716_v37  ;;  %v1739_v55 = vsub.f32 %v3571_v46, %v1729_v39 }
 0x670   : > { %v1731_v60 = vpop.permute.xlu0 %1730 }
 0x671   : > { %2805 = vpow2.f32 %v1722_v48  ;;  %v1744_v4 = vmul.f32 1.442695, %v1739_v55  ;;  %v1740_v13 = vsub.f32 %v3591_v30, %v1731_v60  ;;  %v1687_v60 = vsub.f32 %v3571_v46, %v3624_v61 }
 0x672   : > { %v1753_v14 = vpop.permute.xlu1 %1752 }
 0x673   : > { %2807 = vpow2.f32 %v1744_v4  ;;  %v1746_v21 = vmul.f32 1.442695, %v1740_v13  ;;  %v1763_v29 = vsub.f32 %v3571_v46, %v1753_v14  ;;  %v1692_v4 = vmul.f32 1.442695, %v1687_v60 }
 0x674   : > { %v1755_v38 = vpop.permute.xlu0 %1754  ;;  %v1694_v13 = vmul.f32 1.442695, %v1688_v3 }
 0x675   : > { %2809 = vpow2.f32 %v1746_v21  ;;  %v1768_v45 = vmul.f32 1.442695, %v1763_v29  ;;  %v1764_v47 = vsub.f32 %v3591_v30, %v1755_v38  ;;  %v1689_v38 = vsub.f32 %v3589_v24, %v3647_v16 }
 0x676   : > { %v1777_v54 = vpop.permute.xlu1 %1776 }
 0x677   : > { %2811 = vpow2.f32 %v1768_v45  ;;  %v1770_v59 = vmul.f32 1.442695, %v1764_v47  ;;  %v1787_v56 = vsub.f32 %v3571_v46, %v1777_v54 }
 0x678   : > { %v1779_v50 = vpop.permute.xlu0 %1778  ;;  %2813 = vpow2.f32 %v1690_v40 }
 0x679   : > { %v3684_v52 = vpop.eup %2803  ;;  %2815 = vpow2.f32 %v1770_v59  ;;  %v1792_v27 = vmul.f32 1.442695, %v1787_v56  ;;  %v1788_v6 = vsub.f32 %v3591_v30, %v1779_v50  ;;  %v1696_v56 = vmul.f32 1.442695, %v1689_v38 }
 0x67a   : > { %1804 = vrot.lane.b32.xlu1 %v3684_v52, %s3059_s19  ;;  %v1709_v7 = vpop.permute.xlu1 %1708 }
 0x67b   : > { %v3689_v15 = vpop.eup %2805  ;;  %2817 = vpow2.f32 %v1792_v27  ;;  %v1794_v19 = vmul.f32 1.442695, %v1788_v6  ;;  %v1717_v20 = vsub.f32 %v3589_v24, %v1709_v7 }
 0x67c   : > { %1806 = vrot.lane.b32.xlu0 %v3689_v15, %s3059_s19  ;;  %v1803_v26 = vpop.permute.xlu0 %1802 }
 0x67d   : > { %v3694_v28 = vpop.eup %2807  ;;  %2819 = vpow2.f32 %v1794_v19  ;;  %v1724_v34 = vmul.f32 1.442695, %v1717_v20 }
 0x67e   : > { %1824 = vrot.lane.b32.xlu1 %v3694_v28, %s3058_s21  ;;  %v1733_v36 = vpop.permute.xlu1 %1732 }
 0x67f   : > { %v3698_v42 = vpop.eup %2809  ;;  %2821 = vpow2.f32 %v1724_v34  ;;  %v1741_v5 = vsub.f32 %v3589_v24, %v1733_v36 }
 0x680   : > { %1826 = vrot.lane.b32.xlu0 %v3698_v42, %s3058_s21  ;;  %v1823_v49 = vpop.permute.xlu0 %1822 }
 0x681   : > { %v3703_v1 = vpop.eup %2811  ;;  %v1748_v43 = vmul.f32 1.442695, %v1741_v5 }
 0x682   : > { %v2814_v41 = vpop.eup %2813  ;;  %1844 = vrot.lane.b32.xlu1 %v3703_v1, %s3060_s29  ;;  %v1757_v51 = vpop.permute.xlu1 %1756 }
 0x683   : > { %v3707_v57 = vpop.eup %2815  ;;  %v1814_v62 = vadd.f32 %v2814_v41, %v1803_v26  ;;  %2823 = vpow2.f32 %v1748_v43  ;;  %v1765_v0 = vsub.f32 %v3589_v24, %v1757_v51 }
 0x684   : > { %1846 = vrot.lane.b32.xlu0 %v3707_v57, %s3060_s29  ;;  %v1843_v44 = vpop.permute.xlu0 %1842 }
 0x685   : > { %v3712_v18 = vpop.eup %2817  ;;  %v1834_v25 = vadd.f32 %v1823_v49, %v1814_v62  ;;  %v1772_v33 = vmul.f32 1.442695, %v1765_v0 }
 0x686   : > { %1864 = vrot.lane.b32.xlu1 %v3712_v18, %s3061_s30  ;;  %v1781_v9 = vpop.permute.xlu1 %1780 }
 0x687   : > { %v3716_v10 = vpop.eup %2819  ;;  %2825 = vpow2.f32 %v1772_v33  ;;  %v1854_v11 = vadd.f32 %v1843_v44, %v1834_v25  ;;  %v1789_v2 = vsub.f32 %v3589_v24, %v1781_v9 }
 0x688   : > { %1866 = vrot.lane.b32.xlu0 %v3716_v10, %s3061_s30  ;;  %v1863_v8 = vpop.permute.xlu0 %1862 }
 0x689   : > { %v3721_v12 = vpop.eup %2821  ;;  %v1796_v31 = vmul.f32 1.442695, %v1789_v2  ;;  %v1874_v63 = vadd.f32 %v1863_v8, %v1854_v11  ;;  %v1610_v2 = vmul.f32 1.442695, %v3577_v53 }
 0x68a   : > { %1808 = vrot.lane.b32.xlu1 %v3721_v12, %s3059_s19 }
 0x68b   : > { %2827 = vpow2.f32 %v1796_v31 }
 0x68c   : > { %2829 = vrcp.f32 %v1874_v63 }
 0x68d   : > { %v3725_v32 = vpop.eup %2823  ;;  %2831 = vpow2.f32 %v1692_v4 }
 0x68e   : > { %1828 = vrot.lane.b32.xlu1 %v3725_v32, %s3058_s21  ;;  %2833 = vpow2.f32 %v1694_v13 }
 0x68f   : > { %2835 = vpow2.f32 %v1696_v56 }
 0x691   : > { %v3729_v37 = vpop.eup %2825 }
 0x692   : > { %1848 = vrot.lane.b32.xlu1 %v3729_v37, %s3060_s29 }
 0x695   : > { %v3733_v39 = vpop.eup %2827 }
 0x696   : > { %v2830_v48 = vpop.eup %2829  ;;  %1868 = vrot.lane.b32.xlu1 %v3733_v39, %s3061_s30 }
 0x697   : > { %1894 = vrot.lane.b32.xlu0 %v2830_v48, %s3062_s20  ;;  %v3738_v55 = vmul.f32 %v2830_v48, %v2814_v41  ;;  %v2832_v40 = vpop.eup %2831 }
 0x698   : > { %v2834_v54 = vpop.eup %2833 }
 0x699   : > { %v2836_v5 = vpop.eup %2835 }
 0x69b   : > { %1910 = vrot.lane.b32.xlu0 %v2830_v48, %s3063_s11 }
 0x69f   : > { %1926 = vrot.lane.b32.xlu0 %v2830_v48, %s3064_s13 }
 0x6a3   : > { %1942 = vrot.lane.b32.xlu0 %v2830_v48, %s3065_s18 }
 0x6ec   : > { %v1805_v14 = vpop.permute.xlu1 %1804 }
 0x6ed   : > { %v1815_v47 = vadd.f32 %v2832_v40, %v1805_v14 }
 0x6ee   : > { %v1807_v21 = vpop.permute.xlu0 %1806 }
 0x6ef   : > { %v1816_v61 = vadd.f32 %v2834_v54, %v1807_v21 }
 0x6f0   : > { %v1825_v29 = vpop.permute.xlu1 %1824 }
 0x6f1   : > { %v1835_v50 = vadd.f32 %v1825_v29, %v1815_v47 }
 0x6f2   : > { %v1827_v45 = vpop.permute.xlu0 %1826 }
 0x6f3   : > { %v1836_v35 = vadd.f32 %v1827_v45, %v1816_v61 }
 0x6f4   : > { %v1845_v59 = vpop.permute.xlu1 %1844 }
 0x6f5   : > { %v1855_v6 = vadd.f32 %v1845_v59, %v1835_v50 }
 0x6f6   : > { %v1847_v27 = vpop.permute.xlu0 %1846 }
 0x6f7   : > { %v1856_v19 = vadd.f32 %v1847_v27, %v1836_v35 }
 0x6f8   : > { %v1865_v7 = vpop.permute.xlu1 %1864 }
 0x6f9   : > { %v1875_v20 = vadd.f32 %v1865_v7, %v1855_v6 }
 0x6fa   : > { %v1867_v26 = vpop.permute.xlu0 %1866 }
 0x6fb   : > { %2837 = vrcp.f32 %v1875_v20  ;;  %v1876_v34 = vadd.f32 %v1867_v26, %v1856_v19 }
 0x6fc   : > { %v1809_v36 = vpop.permute.xlu1 %1808 }
 0x6fd   : > { %2839 = vrcp.f32 %v1876_v34  ;;  %v1817_v49 = vadd.f32 %v2836_v5, %v1809_v36 }
 0x700   : > { %v1829_v16 = vpop.permute.xlu1 %1828 }
 0x701   : > { %v1837_v51 = vadd.f32 %v1829_v16, %v1817_v49 }
 0x704   : > { %v1849_v43 = vpop.permute.xlu1 %1848 }
 0x705   : > { %v2838_v41 = vpop.eup %2837  ;;  %v1857_v44 = vadd.f32 %v1849_v43, %v1837_v51 }
 0x706   : > { %1896 = vrot.lane.b32.xlu1 %v2838_v41, %s3062_s20  ;;  %v3750_v62 = vmul.f32 %v2838_v41, %v2832_v40 }
 0x707   : > { %v2840_v0 = vpop.eup %2839 }
 0x708   : > { %1898 = vrot.lane.b32.xlu0 %v2840_v0, %s3062_s20  ;;  %v1869_v25 = vpop.permute.xlu1 %1868  ;;  %v3753_v33 = vmul.f32 %v2840_v0, %v2834_v54 }
 0x709   : > { %v1895_v9 = vpop.permute.xlu0 %1894  ;;  %v1877_v11 = vadd.f32 %v1869_v25, %v1857_v44 }
 0x70a   : > { %1912 = vrot.lane.b32.xlu1 %v2838_v41, %s3063_s11  ;;  %v1906_v31 = vmul.f32 %v3653_v58, %v1895_v9 }
 0x70b   : > { %2841 = vrcp.f32 %v1877_v11 }
 0x70c   : > { %1914 = vrot.lane.b32.xlu0 %v2840_v0, %s3063_s11  ;;  %2843 = vpow2.f32 %v1610_v2  ;;  %v1958_v4 = vsel %vm499_vm1, %v3738_v55, %v1906_v31 }
 0x70d   : > { %v1911_v8 = vpop.permute.xlu0 %1910 }
 0x70e   : > { %1928 = vrot.lane.b32.xlu1 %v2838_v41, %s3064_s13  ;;  %v1922_v48 = vmul.f32 %v3659_v17, %v1911_v8 }
 0x710   : > { %1930 = vrot.lane.b32.xlu0 %v2840_v0, %s3064_s13  ;;  %v1963_v14 = vsel %vm1962_vm2, %v1958_v4, %v1922_v48 }
 0x711   : > { %v1927_v63 = vpop.permute.xlu0 %1926 }
 0x712   : > { %1944 = vrot.lane.b32.xlu1 %v2838_v41, %s3065_s18  ;;  %v1938_v60 = vmul.f32 %v3665_v22, %v1927_v63 }
 0x714   : > { %1946 = vrot.lane.b32.xlu0 %v2840_v0, %s3065_s18  ;;  %v1968_v22 = vsel %vm1967_vm3, %v1963_v14, %v1938_v60 }
 0x715   : > { %v2842_v3 = vpop.eup %2841  ;;  %v1943_v13 = vpop.permute.xlu0 %1942 }
 0x716   : > { %v1954_v58 = vmul.f32 %v3671_v23, %v1943_v13  ;;  %1900 = vrot.lane.b32.xlu1 %v2842_v3, %s3062_s20  ;;  %v3770_v17 = vmul.f32 %v2842_v3, %v2836_v5  ;;  %v2844_v55 = vpop.eup %2843 }
 0x718   : > { %v1973_v21 = vsel %vm1972_vm4, %v1968_v22, %v1954_v58 }
 0x719   : > { %v1978_v29 = vsel %vm1977_vm5, %v1973_v21, %v3577_v53 }
 0x71a   : > { %v1983_v38 = vsel %vm1982_vm6, %v1978_v29, %v2844_v55  ;;  %1916 = vrot.lane.b32.xlu1 %v2842_v3, %s3063_s11 }
 0x71b   : > { %v1988_v23 = vsel %vm1987_vm7, %v1983_v38, 0.0 }
 0x71c   : > { %1992 = vst [vmem:[%s3270_s25] sm:$0xff] %v1988_v23 }
 0x71d   : > { %2920 = shalt.err (!%p2917_p7)
}
 0x71e   : > { %s2921_s15 = scalar_lea.hbm %s3934_s9, 128 }
 0x71f   : > { %p2922_p9 = scmp.ne.s32.totalorder %s3934_s9, %s2921_s15  ;;  %p2927_p1 = scmp.lt.u32.totalorder %s2921_s15, %s3934_s9 }
 0x721   : > { %p2923_p12 = pnand %p2922_p9, %p3964_p8 }
 0x723   : > { %p2924_p0 = pneg %p2923_p12 }
 0x725   : > { %p2929_p13 = pnand %p2927_p1, %p2924_p0 }
 0x727   : > { %2932 = shalt.err (!%p2929_p13)
}
 0x728   : > { %2635 = dma.vmem_to_hbm [thread:$0]  (%p3964_p8), %s2029_s17, 128, %s3934_s9, [#allocation11]   ;;  %1932 = vrot.lane.b32.xlu1 %v2842_v3, %s3064_s13 }
 0x729   : > { %s3067_s22 = smov [#allocation12]  }
 0x72a   : > { %s2041_s28 = sshll.u32 %s3067_s22, 4  ;;  %s2042_s28 = int_to_ptr.vmem [resolvable:$true] %s2041_s28 }
 0x72b   : > { %s2933_s27 = scalar_lea.vmem %s2042_s28, 128  ;;  %p2940_p11 = scmp.lt.s32.totalorder %s2042_s28, %s2042_s28 }
 0x72c   : > { %p2934_p2 = scmp.ne.s32.totalorder %s2042_s28, %s2933_s27  ;;  %p2941_p3 = scmp.lt.s32.totalorder %s2933_s27, %s2933_s27 }
 0x72e   : > { %p2935_p4 = pnand %p2934_p2, %p3964_p8  ;;  %p2942_p5 = por %p2941_p3, %p2940_p11 }
 0x730   : > { %p2936_p10 = pneg %p2935_p4 }
 0x732   : > { %p2943_p6 = pnand %p2942_p5, %p2936_p10 }
 0x734   : > { %2946 = shalt.err (!%p2943_p6)
}
 0x735   : > { %s2947_s17 = scalar_lea.hbm %s3935_s10, 128 }
 0x736   : > { %p2948_p7 = scmp.ne.s32.totalorder %s3935_s10, %s2947_s17  ;;  %p2953_p0 = scmp.lt.u32.totalorder %s2947_s17, %s3935_s10 }
 0x738   : > { %p2949_p9 = pnand %p2948_p7, %p3964_p8 }
 0x73a   : > { %p2950_p12 = pneg %p2949_p9 }
 0x73c   : > { %p2955_p1 = pnand %p2953_p0, %p2950_p12 }
 0x73e   : > { %2958 = shalt.err (!%p2955_p1)
}
 0x73f   : > { %2637 = dma.vmem_to_hbm [thread:$0]  (%p3964_p8), %s2042_s28, 128, %s3935_s10, [#allocation11]   ;;  %1948 = vrot.lane.b32.xlu1 %v2842_v3, %s3065_s18  ;;  %v1612_v45 = vmul.f32 1.442695, %v3571_v46  ;;  %v1614_v54 = vmul.f32 1.442695, %v3591_v30 }
 0x740   : > { %s2246_s18 = sshll.u32 %s3041_s16, 9  ;;  %s2012_s22 = sshll.u32 %s3270_s25, 4  ;;  %s3868_s22 = int_to_ptr.vmem [resolvable:$true] %s2012_s22 }
 0x741   : > { %2845 = vpow2.f32 %v1612_v45  ;;  %s3865_s15 = scalar_lea.hbm %s3933_s8, %s2246_s18  ;;  %s3874_s16 = scalar_lea.sflag [#allocation6], %s433_s12 }
 0x742   : > { %2847 = vpow2.f32 %v1614_v54  ;;  %s2959_s21 = scalar_lea.vmem %s3868_s22, 512  ;;  %p3965_p2 = scmp.ne.s32.totalorder %s3955_s24, 0 }
 0x743   : > { %p2960_p13 = scmp.ne.s32.totalorder %s3868_s22, %s2959_s21  ;;  %s3068_s17 = smov [#allocation9]  }
 0x744   : > { %s2963_s19 = sshll.u32 %s3068_s17, 4  ;;  %s2964_s19 = int_to_ptr.vmem [resolvable:$false] %s2963_s19 }
 0x745   : > { %p2961_p4 = pnand %p2960_p13, %p3965_p2  ;;  %s2965_s13 = scalar_lea.vmem %s2964_s19, 1024 }
 0x746   : > { %p2966_p11 = scmp.lt.s32.totalorder %s3868_s22, %s2964_s19  ;;  %p2967_p3 = scmp.lt.s32.totalorder %s2965_s13, %s2959_s21 }
 0x747   : > { %p2962_p10 = pneg %p2961_p4 }
 0x748   : > { %p2968_p5 = por %p2967_p3, %p2966_p11 }
 0x74a   : > { %p2969_p6 = pnand %p2968_p5, %p2962_p10 }
 0x778   : > { %v1897_v53 = vpop.permute.xlu1 %1896 }
 0x779   : > { %v1907_v56 = vmul.f32 %v3684_v52, %v1897_v53 }
 0x77a   : > { %v1899_v40 = vpop.permute.xlu0 %1898 }
 0x77b   : > { %v1908_v27 = vmul.f32 %v3689_v15, %v1899_v40  ;;  %v1959_v19 = vsel %vm499_vm1, %v3750_v62, %v1907_v56 }
 0x77c   : > { %v1913_v47 = vpop.permute.xlu1 %1912 }
 0x77d   : > { %v1923_v50 = vmul.f32 %v3694_v28, %v1913_v47  ;;  %v1960_v28 = vsel %vm499_vm1, %v3753_v33, %v1908_v27 }
 0x77e   : > { %v1915_v59 = vpop.permute.xlu0 %1914 }
 0x77f   : > { %v1924_v7 = vmul.f32 %v3698_v42, %v1915_v59  ;;  %v1964_v34 = vsel %vm1962_vm2, %v1959_v19, %v1923_v50 }
 0x780   : > { %v1929_v61 = vpop.permute.xlu1 %1928 }
 0x781   : > { %v1939_v35 = vmul.f32 %v3703_v1, %v1929_v61  ;;  %v1965_v36 = vsel %vm1962_vm2, %v1960_v28, %v1924_v7 }
 0x782   : > { %v1931_v6 = vpop.permute.xlu0 %1930 }
 0x783   : > { %v1940_v20 = vmul.f32 %v3707_v57, %v1931_v6  ;;  %v1969_v15 = vsel %vm1967_vm3, %v1964_v34, %v1939_v35  ;;  %v2846_v57 = vpop.eup %2845 }
 0x784   : > { %v1945_v26 = vpop.permute.xlu1 %1944  ;;  %v2848_v51 = vpop.eup %2847 }
 0x785   : > { %v1955_v52 = vmul.f32 %v3712_v18, %v1945_v26  ;;  %v1970_v5 = vsel %vm1967_vm3, %v1965_v36, %v1940_v20 }
 0x786   : > { %v1947_v1 = vpop.permute.xlu0 %1946 }
 0x787   : > { %v1974_v42 = vsel %vm1972_vm4, %v1969_v15, %v1955_v52  ;;  %v1956_v16 = vmul.f32 %v3716_v10, %v1947_v1  ;;  %v1616_v10 = vmul.f32 1.442695, %v3589_v24 }
 0x788   : > { %v1979_v18 = vsel %vm1977_vm5, %v1974_v42, %v3571_v46  ;;  %v1901_v49 = vpop.permute.xlu1 %1900 }
 0x789   : > { %v1984_v43 = vsel %vm1982_vm6, %v1979_v18, %v2846_v57  ;;  %v1975_v41 = vsel %vm1972_vm4, %v1970_v5, %v1956_v16  ;;  %2849 = vpow2.f32 %v1616_v10  ;;  %v1909_v33 = vmul.f32 %v3721_v12, %v1901_v49 }
 0x78a   : > { %v1989_v62 = vsel %vm1987_vm7, %v1984_v43, 0.0  ;;  %v1980_v0 = vsel %vm1977_vm5, %v1975_v41, %v3591_v30 }
 0x78b   : > { %1993 = vst [vmem:[%s3270_s25 + $0x8] sm:$0xff] %v1989_v62  ;;  %v1985_v44 = vsel %vm1982_vm6, %v1980_v0, %v2848_v51  ;;  %v1961_v2 = vsel %vm499_vm1, %v3770_v17, %v1909_v33 }
 0x78c   : > { %v1990_v46 = vsel %vm1987_vm7, %v1985_v44, 0.0  ;;  %v1917_v25 = vpop.permute.xlu1 %1916 }
 0x78d   : > { %1994 = vst [vmem:[%s3270_s25 + $0x10] sm:$0xff] %v1990_v46  ;;  %v1925_v11 = vmul.f32 %v3725_v32, %v1917_v25 }
 0x78f   : > { %v1966_v31 = vsel %vm1962_vm2, %v1961_v2, %v1925_v11 }
 0x793   : > { %v2850_v32 = vpop.eup %2849 }
 0x79a   : > { %v1933_v9 = vpop.permute.xlu1 %1932 }
 0x79b   : > { %v1941_v30 = vmul.f32 %v3729_v37, %v1933_v9 }
 0x79d   : > { %v1971_v48 = vsel %vm1967_vm3, %v1966_v31, %v1941_v30 }
 0x7b1   : > { %v1949_v8 = vpop.permute.xlu1 %1948 }
 0x7b2   : > { %v1957_v63 = vmul.f32 %v3733_v39, %v1949_v8 }
 0x7b4   : > { %v1976_v12 = vsel %vm1972_vm4, %v1971_v48, %v1957_v63 }
 0x7b5   : > { %v1981_v37 = vsel %vm1977_vm5, %v1976_v12, %v3589_v24 }
 0x7b6   : > { %v1986_v60 = vsel %vm1982_vm6, %v1981_v37, %v2850_v32 }
 0x7b7   : > { %v1991_v39 = vsel %vm1987_vm7, %v1986_v60, 0.0 }
 0x7b8   : > { %1995 = vst [vmem:[%s3270_s25 + $0x18] sm:$0xff] %v1991_v39 }
 0x7b9   : > { %2972 = shalt.err (!%p2969_p6)
}
 0x7ba   : > { %s2973_s12 = scalar_lea.hbm %s3865_s15, 512  ;;  %s2977_s30 = scalar_lea.hbm %s3933_s8, 1024 }
 0x7bb   : > { %p2974_p7 = scmp.ne.s32.totalorder %s3865_s15, %s2973_s12  ;;  %p2978_p0 = scmp.lt.u32.totalorder %s3865_s15, %s3933_s8 }
 0x7bc   : > { %p2979_p1 = scmp.lt.u32.totalorder %s2977_s30, %s2973_s12  ;;  %p2981_p4 = scmp.lt.u32.totalorder %s2973_s12, %s3865_s15 }
 0x7bd   : > { %p2975_p9 = pnand %p2974_p7, %p3965_p2 }
 0x7be   : > { %p2980_p13 = por %p2979_p1, %p2978_p0 }
 0x7bf   : > { %p2976_p12 = pneg %p2975_p9 }
 0x7c0   : > { %p2982_p10 = por %p2981_p4, %p2980_p13 }
 0x7c2   : > { %p2983_p11 = pnand %p2982_p10, %p2976_p12 }
 0x7c4   : > { %2986 = shalt.err (!%p2983_p11)
}
 0x7c5   : > { %s3069_s18 = smov 128  }
 0x7c6   : > { %2633 = dma.vmem_to_hbm [thread:$0]  (%p3965_p2), %s3868_s22, 512, %s3865_s15, %s3874_s16, %s3069_s18, %s3069_s18, %s3063_s11  }
 0x7c7   : > { %3020 = dma.done.wait (%p3964_p8), [#allocation11], 256  }
 0x7c8   : > { %3022 = vsyncadd (%p3964_p8), [#allocation11], 4294967040 }
 0x7c9 PF: > { %s3966_s28 = sld [smem:[#allocation20_spill]]  ;;  %s3967_s27 = sld [smem:[#allocation17_spill]] }
 0x7ca   : > { %s3968_s21 = sld [smem:[#allocation22_spill]] }
 0x7cf   : > { %p2662_p3 = scmp.ge.s32.totalorder %s3966_s28, 2  ;;  %s2061_s17 = sand.u32 1, %s3967_s27  }
 0x7d0   : > { %p3969_p5 = scmp.ne.s32.totalorder %s3968_s21, 0  ;;  %s2062_s24 = scalar_lea.sflag [#allocation6], %s2061_s17 }
 0x7d2   : > { %p2651_p6 = pnand %p2662_p3, %p3969_p5 }
 0x7d4   : > { %3024 = dma.done.wait (!%p2651_p6), %s2062_s24, 512  }
 0x7d5   : > { %3026 = vsyncadd (!%p2651_p6), %s2062_s24, 4294966784  ;;  %s27_s18 = sadd.s32 1, %s3966_s28   ;;  %s3970_s11 = sld [smem:[#allocation18_spill]] }
 0x7d6   : > { %p24_p7 = scmp.ge.s32.totalorder %s27_s18, 4   ;;  %s3971_s15 = sld [smem:[#allocation23_spill]] }
 0x7d7   : > { %s3972_s16 = sld [smem:[#allocation19_spill]]  ;;  %s3973_s17 = sld [smem:[#allocation21_spill]] }
 0x7d8   : > { %s3974_s13 = smov %s3033_s14  ;;  %26 = sbr.rel (!%p24_p7) target bundleno = 7 (0x7), region = 131 }
 0x7db   : > { %s3975_s14 = smov %s3970_s11 }
 0x7df   :  { %2067 = vsyncpa [#allocation5], 1 }
 0x7e0   :  { %2069 = vsyncpa [#allocation5 + $0x1], 1 }
 0x7e1   :  { %2070 = vsyncpa [#allocation8], 1 }
 0x7e2   :  { %2071 = vsyncpa [#allocation6], 1 }
 0x7e3   :  { %2073 = vsyncpa [#allocation6 + $0x1], 1 }
 0x7e4   :  { %2074 = vsyncpa [#allocation11], 1 }

</bundles_post_ra>
